<compile_context>
chip_gen: v7x
topology: tpu7x:2x2x1
jax: 0.10.0
libtpu: 0.0.40
codegen_flags: <defaults>
</compile_context>

<pallas_src>
import jax
import jax.numpy as jnp
from jax.experimental import pallas as pl
from jax.experimental.pallas import tpu as pltpu

NEG_SLOPE = 0.01   # nn.LeakyReLU default negative_slope
BN_EPS = 1e-5      # nn.BatchNorm2d default eps


def _lrelu(v):
    return jnp.where(v > 0, v, NEG_SLOPE * v)


def _cdiv(a, b):
    return -(-a // b)


def _round_up(a, b):
    return _cdiv(a, b) * b


# ----------------------------- Pallas kernels -------------------------------

def _tap_patch(window, offsets, B, T):
    """Gather 9 lane-shifted (C, T) tap views of `window` ((C, T + 2B)) and
    stack them into a (9*C, T) im2col patch (tap-major rows)."""
    wtot = window.shape[-1]
    pieces = []
    for k in offsets:
        shifted = window if k == 0 else pltpu.roll(window, (-k) % wtot, 1)
        pieces.append(shifted[:, B:B + T])          # aligned slice (B % 128 == 0)
    return jnp.concatenate(pieces, axis=0)


def _make_pass1_kernel(T, B, offsets):
    # 1x1 conv + LeakyReLU (shortcut) -> 3x3 conv + LeakyReLU, partial BN1 stats
    def kernel(x_h, x_m, x_t, m_h, m_m, m_t, w1t, b1, w2f, b2,
               y1_ref, s1_ref, q1_ref):
        xw = jnp.concatenate([x_h[...], x_m[...], x_t[...]], axis=1)   # (Cin, T+2B)
        mw = jnp.concatenate([m_h[...], m_m[...], m_t[...]], axis=1)   # (1,   T+2B)
        sc = _lrelu(jnp.dot(w1t[...], xw,
                            preferred_element_type=jnp.float32) + b1[...])
        sc = sc * mw                       # zero ring == conv2's zero padding
        patch = _tap_patch(sc, offsets, B, T).astype(jnp.bfloat16)
        y = jnp.dot(w2f[...], patch,
                    preferred_element_type=jnp.float32) + b2[...]
        y = _lrelu(y) * m_m[...]           # zero non-interior positions
        y1_ref[...] = y
        s1_ref[0] = jnp.sum(y, axis=1, keepdims=True)        # masked partial sums
        q1_ref[0] = jnp.sum(y * y, axis=1, keepdims=True)
    return kernel


def _make_pass2_kernel(T, B, offsets):
    # BN1 affine -> dilated 3x3 conv + LeakyReLU, partial BN2 stats
    def kernel(y1_h, y1_m, y1_t, m_h, m_m, m_t, a1, c1, w3f, b3,
               y2_ref, s2_ref, q2_ref):
        yw = jnp.concatenate([y1_h[...], y1_m[...], y1_t[...]], axis=1)
        mw = jnp.concatenate([m_h[...], m_m[...], m_t[...]], axis=1)
        r1 = (a1[...] * yw + c1[...]) * mw   # BN1; re-zero ring = conv3 padding
        patch = _tap_patch(r1, offsets, B, T).astype(jnp.bfloat16)
        y = _lrelu(jnp.dot(w3f[...], patch,
                           preferred_element_type=jnp.float32) + b3[...])
        y = y * m_m[...]
        y2_ref[...] = y
        s2_ref[0] = jnp.sum(y, axis=1, keepdims=True)
        q2_ref[0] = jnp.sum(y * y, axis=1, keepdims=True)
    return kernel


def _pass3_kernel(x_m, y2_m, w1t, b1, a2, c2, o_ref):
    # recompute shortcut (1x1, cheaper than re-reading a Cout slab), BN2 affine,
    # residual add.
    sc = _lrelu(jnp.dot(w1t[...], x_m[...],
                        preferred_element_type=jnp.float32) + b1[...])
    o_ref[...] = (sc + a2[...] * y2_m[...] + c2[...]).astype(o_ref.dtype)


# ------------------------------- Forward pass --------------------------------

def res_context_block(params, x_nchw, *, tile_lanes=2048):
    N, Cin, H, W = x_nchw.shape
    Cout = params["w1"].shape[1]
    f32 = jnp.float32

    P = 2                                  # single padded grid (max dilation)
    Hp, Wp = H + 2 * P, W + 2 * P
    Ptot = N * Hp * Wp                     # padded positions (lane axis)
    HALO = 2 * Wp + 2                      # largest tap offset (dil=2 conv)
    B = _round_up(HALO, 128)               # head/tail halo block (lanes)
    TB = max(1, min(max(1, tile_lanes // B), _cdiv(Ptot, 2 * B)))
    T = TB * B                             # main tile (lanes), multiple of B
    G = _cdiv(Ptot, T)                     # grid size
    L = G * T                              # stored lane extent

    # glue: channels-first, spatially zero-padded, flattened to (C, L)
    x_cf = jnp.transpose(x_nchw.astype(f32), (1, 0, 2, 3))       # (Cin,N,H,W)
    x_cf = jnp.pad(x_cf, ((0, 0), (0, 0), (P, P), (P, P)))
    x_flat = jnp.pad(x_cf.reshape(Cin, Ptot), ((0, 0), (0, L - Ptot)))
    mask = jnp.pad(jnp.ones((N, H, W), f32), ((0, 0), (P, P), (P, P)))
    mask = jnp.pad(mask.reshape(1, Ptot), ((0, 0), (0, L - Ptot)))

    # parameters in kernel layout (per-channel vectors as (C, 1) columns)
    w1t = params["w1"].T.astype(f32)                              # (Cout, Cin)
    b1 = params["b1"].reshape(Cout, 1).astype(f32)
    w2f = jnp.transpose(params["w2"], (2, 0, 1)).reshape(Cout, 9 * Cout)
    w3f = jnp.transpose(params["w3"], (2, 0, 1)).reshape(Cout, 9 * Cout)
    w2f = w2f.astype(jnp.bfloat16)          # bf16 MXU operands, f32 accumulate
    w3f = w3f.astype(jnp.bfloat16)
    b2 = params["b2"].reshape(Cout, 1).astype(f32)
    b3 = params["b3"].reshape(Cout, 1).astype(f32)
    g1 = params["g1"].reshape(Cout, 1).astype(f32)
    bt1 = params["bt1"].reshape(Cout, 1).astype(f32)
    g2 = params["g2"].reshape(Cout, 1).astype(f32)
    bt2 = params["bt2"].reshape(Cout, 1).astype(f32)

    # conv tap offsets on the flattened padded grid (dilation 1 and 2)
    offs1 = tuple(dy * Wp + dx for dy in (-1, 0, 1) for dx in (-1, 0, 1))
    offs2 = tuple(2 * dy * Wp + 2 * dx for dy in (-1, 0, 1) for dx in (-1, 0, 1))

    head_map = lambda i: (0, jnp.maximum(i * TB - 1, 0))
    main_map = lambda i: (0, i)
    tail_map = lambda i: (0, jnp.minimum((i + 1) * TB, G * TB - 1))
    full_map = lambda i: (0, 0)
    stat_map = lambda i: (i, 0, 0)

    def window_specs(c):
        return [pl.BlockSpec((c, B), head_map),
                pl.BlockSpec((c, T), main_map),
                pl.BlockSpec((c, B), tail_map)]

    cparams = pltpu.CompilerParams(
        dimension_semantics=("parallel",),
        vmem_limit_bytes=32 * 1024 * 1024)

    slab_shape = jax.ShapeDtypeStruct((Cout, L), f32)
    slab_spec = pl.BlockSpec((Cout, T), main_map)
    stat_shape = jax.ShapeDtypeStruct((G, Cout, 1), f32)
    stat_spec = pl.BlockSpec((1, Cout, 1), stat_map)

    # ---- pass 1: shortcut (1x1) + conv2 (3x3) + LeakyReLU + BN1 partial stats
    y1, s1, q1 = pl.pallas_call(
        _make_pass1_kernel(T, B, offs1),
        grid=(G,),
        in_specs=window_specs(Cin) + window_specs(1) + [
            pl.BlockSpec((Cout, Cin), full_map),
            pl.BlockSpec((Cout, 1), full_map),
            pl.BlockSpec((Cout, 9 * Cout), full_map),
            pl.BlockSpec((Cout, 1), full_map)],
        out_specs=[slab_spec, stat_spec, stat_spec],
        out_shape=[slab_shape, stat_shape, stat_shape],
        compiler_params=cparams,
    )(x_flat, x_flat, x_flat, mask, mask, mask, w1t, b1, w2f, b2)

    cnt = float(N * H * W)
    mean1 = jnp.sum(s1, axis=0) / cnt
    var1 = jnp.sum(q1, axis=0) / cnt - mean1 * mean1
    a1 = g1 * jax.lax.rsqrt(var1 + BN_EPS)
    c1 = bt1 - mean1 * a1

    # ---- pass 2: BN1 affine + conv3 (3x3, dil=2) + LeakyReLU + BN2 stats -----
    y2, s2, q2 = pl.pallas_call(
        _make_pass2_kernel(T, B, offs2),
        grid=(G,),
        in_specs=window_specs(Cout) + window_specs(1) + [
            pl.BlockSpec((Cout, 1), full_map),
            pl.BlockSpec((Cout, 1), full_map),
            pl.BlockSpec((Cout, 9 * Cout), full_map),
            pl.BlockSpec((Cout, 1), full_map)],
        out_specs=[slab_spec, stat_spec, stat_spec],
        out_shape=[slab_shape, stat_shape, stat_shape],
        compiler_params=cparams,
    )(y1, y1, y1, mask, mask, mask, a1, c1, w3f, b3)

    mean2 = jnp.sum(s2, axis=0) / cnt
    var2 = jnp.sum(q2, axis=0) / cnt - mean2 * mean2
    a2 = g2 * jax.lax.rsqrt(var2 + BN_EPS)
    c2 = bt2 - mean2 * a2

    # ---- pass 3: recomputed shortcut + BN2 affine + residual add -------------
    out = pl.pallas_call(
        _pass3_kernel,
        grid=(G,),
        in_specs=[pl.BlockSpec((Cin, T), main_map),
                  pl.BlockSpec((Cout, T), main_map),
                  pl.BlockSpec((Cout, Cin), full_map),
                  pl.BlockSpec((Cout, 1), full_map),
                  pl.BlockSpec((Cout, 1), full_map),
                  pl.BlockSpec((Cout, 1), full_map)],
        out_specs=slab_spec,
        out_shape=slab_shape,
        compiler_params=cparams,
    )(x_flat, y2, w1t, b1, a2, c2)

    # TODO(synk): fold the interior crop + NCHW transpose into pass 3's
    # out_spec instead of leaving this relayout to XLA.
    out = out[:, :Ptot].reshape(Cout, N, Hp, Wp)[:, :, P:P + H, P:P + W]
    return jnp.transpose(out, (1, 0, 2, 3))  # back to NCHW


# --------------------------- Pure-JAX reference -------------------------------

def _bn_ref(v, g, b):
    mean = jnp.mean(v, axis=(0, 1, 2), keepdims=True)
    var = jnp.mean((v - mean) ** 2, axis=(0, 1, 2), keepdims=True)
    return (v - mean) * jax.lax.rsqrt(var + BN_EPS) * g.reshape(1, 1, 1, -1) \
        + b.reshape(1, 1, 1, -1)


def reference(params, x_nchw):
    Cin = x_nchw.shape[1]
    Cout = params["w1"].shape[1]
    dn = ("NHWC", "HWIO", "NHWC")
    x = jnp.transpose(x_nchw, (0, 2, 3, 1)).astype(jnp.float32)
    sc = jax.lax.conv_general_dilated(
        x, params["w1"].reshape(1, 1, Cin, Cout), (1, 1), "VALID",
        dimension_numbers=dn) + params["b1"].reshape(1, 1, 1, Cout)
    sc = _lrelu(sc)
    r = jax.lax.conv_general_dilated(
        sc, params["w2"].reshape(3, 3, Cout, Cout), (1, 1), ((1, 1), (1, 1)),
        dimension_numbers=dn) + params["b2"].reshape(1, 1, 1, Cout)
    r = _bn_ref(_lrelu(r), params["g1"], params["bt1"])
    r2 = jax.lax.conv_general_dilated(
        r, params["w3"].reshape(3, 3, Cout, Cout), (1, 1), ((2, 2), (2, 2)),
        rhs_dilation=(2, 2), dimension_numbers=dn) \
        + params["b3"].reshape(1, 1, 1, Cout)
    r2 = _bn_ref(_lrelu(r2), params["g2"], params["bt2"])
    return jnp.transpose(sc + r2, (0, 3, 1, 2))


# ---------------------------------- Main --------------------------------------

if __name__ == "__main__":
    N, Cin, Cout, H, W = 2, 4, 8, 16, 16

    key = jax.random.PRNGKey(0)
    ks = jax.random.split(key, 11)
    params = {
        "w1": 0.30 * jax.random.normal(ks[0], (Cin, Cout), jnp.float32),
        "b1": 0.10 * jax.random.normal(ks[1], (1, Cout), jnp.float32),
        "w2": 0.15 * jax.random.normal(ks[2], (9, Cout, Cout), jnp.float32),
        "b2": 0.10 * jax.random.normal(ks[3], (1, Cout), jnp.float32),
        "g1": 1.0 + 0.10 * jax.random.normal(ks[4], (1, Cout), jnp.float32),
        "bt1": 0.10 * jax.random.normal(ks[5], (1, Cout), jnp.float32),
        "w3": 0.15 * jax.random.normal(ks[6], (9, Cout, Cout), jnp.float32),
        "b3": 0.10 * jax.random.normal(ks[7], (1, Cout), jnp.float32),
        "g2": 1.0 + 0.10 * jax.random.normal(ks[8], (1, Cout), jnp.float32),
        "bt2": 0.10 * jax.random.normal(ks[9], (1, Cout), jnp.float32),
    }
    x = jax.random.normal(ks[10], (N, Cin, H, W), jnp.float32)

    fwd = jax.jit(res_context_block)
    out = fwd(params, x)
    jax.block_until_ready(out)

    ref = reference(params, x)
    jax.block_until_ready(ref)

    assert out.shape == (N, Cout, H, W), out.shape
    # Tolerance loosened vs a pure-f32 run because the two 3x3 convs use bf16
    # MXU operands (f32 accumulation); observed error is well below this.
    err = float(jnp.max(jnp.abs(out - ref)))
    assert jnp.allclose(out, ref, atol=3e-2, rtol=3e-2), f"max abs err {err}"

    print("KERNEL_OK")
</pallas_src>

<mosaic_0001>
module attributes {stable_mosaic.version = 11 : i64} {
  func.func @kernel(%arg0: i32, %arg1: memref<4x128xf32, #tpu.memory_space<vmem>>, %arg2: memref<4x512xf32, #tpu.memory_space<vmem>>, %arg3: memref<4x128xf32, #tpu.memory_space<vmem>>, %arg4: memref<1x128xf32, #tpu.memory_space<vmem>>, %arg5: memref<1x512xf32, #tpu.memory_space<vmem>>, %arg6: memref<1x128xf32, #tpu.memory_space<vmem>>, %arg7: memref<8x4xf32, #tpu.memory_space<vmem>>, %arg8: memref<8x1xf32, #tpu.memory_space<vmem>>, %arg9: memref<8x72xbf16, #tpu.memory_space<vmem>>, %arg10: memref<8x1xf32, #tpu.memory_space<vmem>>, %arg11: memref<8x512xf32, #tpu.memory_space<vmem>>, %arg12: memref<1x8x1xf32, #tpu.memory_space<vmem>>, %arg13: memref<1x8x1xf32, #tpu.memory_space<vmem>>) attributes {dimension_semantics = [#tpu.dimension_semantics<parallel>], iteration_bounds = array<i64: 2>, scalar_prefetch = 0 : i64, scratch_operands = 0 : i64, tpu.core_type = #tpu.core_type<tc>, window_params = [{transform_indices = @transform_0, window_bounds = array<i64: 4, 128>}, {transform_indices = @transform_1, window_bounds = array<i64: 4, 512>}, {transform_indices = @transform_2, window_bounds = array<i64: 4, 128>}, {transform_indices = @transform_3, window_bounds = array<i64: 1, 128>}, {transform_indices = @transform_4, window_bounds = array<i64: 1, 512>}, {transform_indices = @transform_5, window_bounds = array<i64: 1, 128>}, {pipeline_mode = #tpu.pipeline_mode<synchronous>, transform_indices = @transform_6, window_bounds = array<i64: 8, 4>}, {pipeline_mode = #tpu.pipeline_mode<synchronous>, transform_indices = @transform_7, window_bounds = array<i64: 8, 1>}, {pipeline_mode = #tpu.pipeline_mode<synchronous>, transform_indices = @transform_8, window_bounds = array<i64: 8, 72>}, {pipeline_mode = #tpu.pipeline_mode<synchronous>, transform_indices = @transform_9, window_bounds = array<i64: 8, 1>}, {transform_indices = @transform_10, window_bounds = array<i64: 8, 512>}, {transform_indices = @transform_11, window_bounds = array<i64: 1, 8, 1>}, {transform_indices = @transform_12, window_bounds = array<i64: 1, 8, 1>}]} {
    %c0 = arith.constant 0 : index
    %c0_0 = arith.constant 0 : index
    %0 = vector.load %arg1[%c0, %c0_0] : memref<4x128xf32, #tpu.memory_space<vmem>>, vector<4x128xf32>
    %c0_1 = arith.constant 0 : index
    %c0_2 = arith.constant 0 : index
    %1 = vector.load %arg2[%c0_1, %c0_2] : memref<4x512xf32, #tpu.memory_space<vmem>>, vector<4x512xf32>
    %c0_3 = arith.constant 0 : index
    %c0_4 = arith.constant 0 : index
    %2 = vector.load %arg3[%c0_3, %c0_4] : memref<4x128xf32, #tpu.memory_space<vmem>>, vector<4x128xf32>
    %3 = tpu.concatenate %0, %1, %2 in 1 : vector<4x128xf32>, vector<4x512xf32>, vector<4x128xf32> -> vector<4x768xf32>
    %c0_5 = arith.constant 0 : index
    %c0_6 = arith.constant 0 : index
    %4 = vector.load %arg4[%c0_5, %c0_6] : memref<1x128xf32, #tpu.memory_space<vmem>>, vector<1x128xf32>
    %c0_7 = arith.constant 0 : index
    %c0_8 = arith.constant 0 : index
    %5 = vector.load %arg5[%c0_7, %c0_8] : memref<1x512xf32, #tpu.memory_space<vmem>>, vector<1x512xf32>
    %c0_9 = arith.constant 0 : index
    %c0_10 = arith.constant 0 : index
    %6 = vector.load %arg6[%c0_9, %c0_10] : memref<1x128xf32, #tpu.memory_space<vmem>>, vector<1x128xf32>
    %7 = tpu.concatenate %4, %5, %6 in 1 : vector<1x128xf32>, vector<1x512xf32>, vector<1x128xf32> -> vector<1x768xf32>
    %c0_11 = arith.constant 0 : index
    %c0_12 = arith.constant 0 : index
    %8 = vector.load %arg7[%c0_11, %c0_12] : memref<8x4xf32, #tpu.memory_space<vmem>>, vector<8x4xf32>
    %cst = arith.constant dense<0.000000e+00> : vector<8x768xf32>
    %9 = tpu.matmul %8, %3, %cst {dimension_numbers = #tpu.dot_dimension_numbers<[1], [0], [0], [1], [0, 0, 1, 1], [], []>} : vector<8x4xf32>, vector<4x768xf32>, vector<8x768xf32> -> vector<8x768xf32>
    %c0_13 = arith.constant 0 : index
    %c0_14 = arith.constant 0 : index
    %10 = vector.load %arg8[%c0_13, %c0_14] : memref<8x1xf32, #tpu.memory_space<vmem>>, vector<8x1xf32>
    %11 = vector.broadcast %10 : vector<8x1xf32> to vector<8x768xf32>
    %12 = arith.addf %9, %11 : vector<8x768xf32>
    %cst_15 = arith.constant 0.000000e+00 : f32
    %13 = vector.broadcast %cst_15 : f32 to vector<8x768xf32>
    %14 = arith.cmpf ogt, %12, %13 : vector<8x768xf32>
    %cst_16 = arith.constant 0.00999999977 : f32
    %15 = vector.broadcast %cst_16 : f32 to vector<8x768xf32>
    %16 = arith.mulf %15, %12 : vector<8x768xf32>
    %17 = arith.select %14, %12, %16 : vector<8x768xi1>, vector<8x768xf32>
    %18 = vector.broadcast %7 : vector<1x768xf32> to vector<8x768xf32>
    %19 = arith.mulf %17, %18 : vector<8x768xf32>
    %c21_i32 = arith.constant 21 : i32
    %20 = tpu.dynamic_rotate %19 by %c21_i32 dim 1 : vector<8x768xf32>, i32 -> vector<8x768xf32>
    %21 = vector.extract_strided_slice %20 {offsets = [0, 128], sizes = [8, 512], strides = [1, 1]} : vector<8x768xf32> to vector<8x512xf32>
    %c20_i32 = arith.constant 20 : i32
    %22 = tpu.dynamic_rotate %19 by %c20_i32 dim 1 : vector<8x768xf32>, i32 -> vector<8x768xf32>
    %23 = vector.extract_strided_slice %22 {offsets = [0, 128], sizes = [8, 512], strides = [1, 1]} : vector<8x768xf32> to vector<8x512xf32>
    %c19_i32 = arith.constant 19 : i32
    %24 = tpu.dynamic_rotate %19 by %c19_i32 dim 1 : vector<8x768xf32>, i32 -> vector<8x768xf32>
    %25 = vector.extract_strided_slice %24 {offsets = [0, 128], sizes = [8, 512], strides = [1, 1]} : vector<8x768xf32> to vector<8x512xf32>
    %c1_i32 = arith.constant 1 : i32
    %26 = tpu.dynamic_rotate %19 by %c1_i32 dim 1 : vector<8x768xf32>, i32 -> vector<8x768xf32>
    %27 = vector.extract_strided_slice %26 {offsets = [0, 128], sizes = [8, 512], strides = [1, 1]} : vector<8x768xf32> to vector<8x512xf32>
    %28 = vector.extract_strided_slice %19 {offsets = [0, 128], sizes = [8, 512], strides = [1, 1]} : vector<8x768xf32> to vector<8x512xf32>
    %c767_i32 = arith.constant 767 : i32
    %29 = tpu.dynamic_rotate %19 by %c767_i32 dim 1 : vector<8x768xf32>, i32 -> vector<8x768xf32>
    %30 = vector.extract_strided_slice %29 {offsets = [0, 128], sizes = [8, 512], strides = [1, 1]} : vector<8x768xf32> to vector<8x512xf32>
    %c749_i32 = arith.constant 749 : i32
    %31 = tpu.dynamic_rotate %19 by %c749_i32 dim 1 : vector<8x768xf32>, i32 -> vector<8x768xf32>
    %32 = vector.extract_strided_slice %31 {offsets = [0, 128], sizes = [8, 512], strides = [1, 1]} : vector<8x768xf32> to vector<8x512xf32>
    %c748_i32 = arith.constant 748 : i32
    %33 = tpu.dynamic_rotate %19 by %c748_i32 dim 1 : vector<8x768xf32>, i32 -> vector<8x768xf32>
    %34 = vector.extract_strided_slice %33 {offsets = [0, 128], sizes = [8, 512], strides = [1, 1]} : vector<8x768xf32> to vector<8x512xf32>
    %c747_i32 = arith.constant 747 : i32
    %35 = tpu.dynamic_rotate %19 by %c747_i32 dim 1 : vector<8x768xf32>, i32 -> vector<8x768xf32>
    %36 = vector.extract_strided_slice %35 {offsets = [0, 128], sizes = [8, 512], strides = [1, 1]} : vector<8x768xf32> to vector<8x512xf32>
    %37 = tpu.concatenate %21, %23, %25, %27, %28, %30, %32, %34, %36 in 0 : vector<8x512xf32>, vector<8x512xf32>, vector<8x512xf32>, vector<8x512xf32>, vector<8x512xf32>, vector<8x512xf32>, vector<8x512xf32>, vector<8x512xf32>, vector<8x512xf32> -> vector<72x512xf32>
    %38 = arith.truncf %37 : vector<72x512xf32> to vector<72x512xbf16>
    %c0_17 = arith.constant 0 : index
    %c0_18 = arith.constant 0 : index
    %39 = vector.load %arg9[%c0_17, %c0_18] : memref<8x72xbf16, #tpu.memory_space<vmem>>, vector<8x72xbf16>
    %cst_19 = arith.constant dense<0.000000e+00> : vector<8x512xf32>
    %40 = tpu.matmul %39, %38, %cst_19 {dimension_numbers = #tpu.dot_dimension_numbers<[1], [0], [0], [1], [0, 0, 1, 1], [], []>} : vector<8x72xbf16>, vector<72x512xbf16>, vector<8x512xf32> -> vector<8x512xf32>
    %c0_20 = arith.constant 0 : index
    %c0_21 = arith.constant 0 : index
    %41 = vector.load %arg10[%c0_20, %c0_21] : memref<8x1xf32, #tpu.memory_space<vmem>>, vector<8x1xf32>
    %42 = vector.broadcast %41 : vector<8x1xf32> to vector<8x512xf32>
    %43 = arith.addf %40, %42 : vector<8x512xf32>
    %cst_22 = arith.constant 0.000000e+00 : f32
    %44 = vector.broadcast %cst_22 : f32 to vector<8x512xf32>
    %45 = arith.cmpf ogt, %43, %44 : vector<8x512xf32>
    %cst_23 = arith.constant 0.00999999977 : f32
    %46 = vector.broadcast %cst_23 : f32 to vector<8x512xf32>
    %47 = arith.mulf %46, %43 : vector<8x512xf32>
    %48 = arith.select %45, %43, %47 : vector<8x512xi1>, vector<8x512xf32>
    %c0_24 = arith.constant 0 : index
    %c0_25 = arith.constant 0 : index
    %49 = vector.load %arg5[%c0_24, %c0_25] : memref<1x512xf32, #tpu.memory_space<vmem>>, vector<1x512xf32>
    %50 = vector.broadcast %49 : vector<1x512xf32> to vector<8x512xf32>
    %51 = arith.mulf %48, %50 : vector<8x512xf32>
    %c0_26 = arith.constant 0 : index
    %c0_27 = arith.constant 0 : index
    %52 = vector.load %arg11[%c0_26, %c0_27] : memref<8x512xf32, #tpu.memory_space<vmem>>, vector<8x512xf32>
    tpu.vector_store %arg11[%c0_26, %c0_27], %51 {strides = array<i32>} : memref<8x512xf32, #tpu.memory_space<vmem>>, vector<8x512xf32>,
    %cst_28 = arith.constant dense<0.000000e+00> : vector<8xf32>
    %53 = vector.multi_reduction <add>, %51, %cst_28 [1] : vector<8x512xf32> to vector<8xf32>
    %54 = vector.shape_cast %53 : vector<8xf32> to vector<8x1xf32>
    %c0_29 = arith.constant 0 : index
    %c0_30 = arith.constant 0 : index
    %c0_31 = arith.constant 0 : index
    %55 = vector.load %arg12[%c0_29, %c0_30, %c0_31] : memref<1x8x1xf32, #tpu.memory_space<vmem>>, vector<1x8x1xf32>
    %56 = vector.shape_cast %55 : vector<1x8x1xf32> to vector<8x1xf32>
    %57 = vector.shape_cast %54 : vector<8x1xf32> to vector<1x8x1xf32>
    tpu.vector_store %arg12[%c0_29, %c0_30, %c0_31], %57 {strides = array<i32>} : memref<1x8x1xf32, #tpu.memory_space<vmem>>, vector<1x8x1xf32>,
    %58 = arith.mulf %51, %51 : vector<8x512xf32>
    %cst_32 = arith.constant dense<0.000000e+00> : vector<8xf32>
    %59 = vector.multi_reduction <add>, %58, %cst_32 [1] : vector<8x512xf32> to vector<8xf32>
    %60 = vector.shape_cast %59 : vector<8xf32> to vector<8x1xf32>
    %c0_33 = arith.constant 0 : index
    %c0_34 = arith.constant 0 : index
    %c0_35 = arith.constant 0 : index
    %61 = vector.load %arg13[%c0_33, %c0_34, %c0_35] : memref<1x8x1xf32, #tpu.memory_space<vmem>>, vector<1x8x1xf32>
    %62 = vector.shape_cast %61 : vector<1x8x1xf32> to vector<8x1xf32>
    %63 = vector.shape_cast %60 : vector<8x1xf32> to vector<1x8x1xf32>
    tpu.vector_store %arg13[%c0_33, %c0_34, %c0_35], %63 {strides = array<i32>} : memref<1x8x1xf32, #tpu.memory_space<vmem>>, vector<1x8x1xf32>,
    return
  }
  func.func @transform_0(%arg0: i32) -> (i32, i32) {
    %c4_i32 = arith.constant 4 : i32
    %0 = arith.muli %arg0, %c4_i32 : i32
    %c1_i32 = arith.constant 1 : i32
    %1 = arith.subi %0, %c1_i32 : i32
    %c0_i32 = arith.constant 0 : i32
    %2 = arith.maxsi %1, %c0_i32 : i32
    %c0_i32_0 = arith.constant 0 : i32
    %c0_i32_1 = arith.constant 0 : i32
    return %c0_i32_0, %2 : i32, i32
  }
  func.func @transform_1(%arg0: i32) -> (i32, i32) {
    %c0_i32 = arith.constant 0 : i32
    %c0_i32_0 = arith.constant 0 : i32
    return %c0_i32, %arg0 : i32, i32
  }
  func.func @transform_2(%arg0: i32) -> (i32, i32) {
    %c1_i32 = arith.constant 1 : i32
    %0 = arith.addi %arg0, %c1_i32 : i32
    %c4_i32 = arith.constant 4 : i32
    %1 = arith.muli %0, %c4_i32 : i32
    %c7_i32 = arith.constant 7 : i32
    %2 = arith.minsi %1, %c7_i32 : i32
    %c0_i32 = arith.constant 0 : i32
    %c0_i32_0 = arith.constant 0 : i32
    return %c0_i32, %2 : i32, i32
  }
  func.func @transform_3(%arg0: i32) -> (i32, i32) {
    %c4_i32 = arith.constant 4 : i32
    %0 = arith.muli %arg0, %c4_i32 : i32
    %c1_i32 = arith.constant 1 : i32
    %1 = arith.subi %0, %c1_i32 : i32
    %c0_i32 = arith.constant 0 : i32
    %2 = arith.maxsi %1, %c0_i32 : i32
    %c0_i32_0 = arith.constant 0 : i32
    %c0_i32_1 = arith.constant 0 : i32
    return %c0_i32_0, %2 : i32, i32
  }
  func.func @transform_4(%arg0: i32) -> (i32, i32) {
    %c0_i32 = arith.constant 0 : i32
    %c0_i32_0 = arith.constant 0 : i32
    return %c0_i32, %arg0 : i32, i32
  }
  func.func @transform_5(%arg0: i32) -> (i32, i32) {
    %c1_i32 = arith.constant 1 : i32
    %0 = arith.addi %arg0, %c1_i32 : i32
    %c4_i32 = arith.constant 4 : i32
    %1 = arith.muli %0, %c4_i32 : i32
    %c7_i32 = arith.constant 7 : i32
    %2 = arith.minsi %1, %c7_i32 : i32
    %c0_i32 = arith.constant 0 : i32
    %c0_i32_0 = arith.constant 0 : i32
    return %c0_i32, %2 : i32, i32
  }
  func.func @transform_6(%arg0: i32) -> (i32, i32) {
    %c0_i32 = arith.constant 0 : i32
    %c0_i32_0 = arith.constant 0 : i32
    %c0_i32_1 = arith.constant 0 : i32
    return %c0_i32, %c0_i32_0 : i32, i32
  }
  func.func @transform_7(%arg0: i32) -> (i32, i32) {
    %c0_i32 = arith.constant 0 : i32
    %c0_i32_0 = arith.constant 0 : i32
    %c0_i32_1 = arith.constant 0 : i32
    return %c0_i32, %c0_i32_0 : i32, i32
  }
  func.func @transform_8(%arg0: i32) -> (i32, i32) {
    %c0_i32 = arith.constant 0 : i32
    %c0_i32_0 = arith.constant 0 : i32
    %c0_i32_1 = arith.constant 0 : i32
    return %c0_i32, %c0_i32_0 : i32, i32
  }
  func.func @transform_9(%arg0: i32) -> (i32, i32) {
    %c0_i32 = arith.constant 0 : i32
    %c0_i32_0 = arith.constant 0 : i32
    %c0_i32_1 = arith.constant 0 : i32
    return %c0_i32, %c0_i32_0 : i32, i32
  }
  func.func @transform_10(%arg0: i32) -> (i32, i32) {
    %c0_i32 = arith.constant 0 : i32
    %c0_i32_0 = arith.constant 0 : i32
    return %c0_i32, %arg0 : i32, i32
  }
  func.func @transform_11(%arg0: i32) -> (i32, i32, i32) {
    %c0_i32 = arith.constant 0 : i32
    %c0_i32_0 = arith.constant 0 : i32
    %c0_i32_1 = arith.constant 0 : i32
    return %arg0, %c0_i32, %c0_i32_0 : i32, i32, i32
  }
  func.func @transform_12(%arg0: i32) -> (i32, i32, i32) {
    %c0_i32 = arith.constant 0 : i32
    %c0_i32_0 = arith.constant 0 : i32
    %c0_i32_1 = arith.constant 0 : i32
    return %arg0, %c0_i32, %c0_i32_0 : i32, i32, i32
  }
}

module attributes {stable_mosaic.version = 11 : i64} {
  func.func @kernel(%arg0: i32, %arg1: memref<8x128xf32, #tpu.memory_space<vmem>>, %arg2: memref<8x512xf32, #tpu.memory_space<vmem>>, %arg3: memref<8x128xf32, #tpu.memory_space<vmem>>, %arg4: memref<1x128xf32, #tpu.memory_space<vmem>>, %arg5: memref<1x512xf32, #tpu.memory_space<vmem>>, %arg6: memref<1x128xf32, #tpu.memory_space<vmem>>, %arg7: memref<8x1xf32, #tpu.memory_space<vmem>>, %arg8: memref<8x1xf32, #tpu.memory_space<vmem>>, %arg9: memref<8x72xbf16, #tpu.memory_space<vmem>>, %arg10: memref<8x1xf32, #tpu.memory_space<vmem>>, %arg11: memref<8x512xf32, #tpu.memory_space<vmem>>, %arg12: memref<1x8x1xf32, #tpu.memory_space<vmem>>, %arg13: memref<1x8x1xf32, #tpu.memory_space<vmem>>) attributes {dimension_semantics = [#tpu.dimension_semantics<parallel>], iteration_bounds = array<i64: 2>, scalar_prefetch = 0 : i64, scratch_operands = 0 : i64, tpu.core_type = #tpu.core_type<tc>, window_params = [{transform_indices = @transform_0, window_bounds = array<i64: 8, 128>}, {transform_indices = @transform_1, window_bounds = array<i64: 8, 512>}, {transform_indices = @transform_2, window_bounds = array<i64: 8, 128>}, {transform_indices = @transform_3, window_bounds = array<i64: 1, 128>}, {transform_indices = @transform_4, window_bounds = array<i64: 1, 512>}, {transform_indices = @transform_5, window_bounds = array<i64: 1, 128>}, {pipeline_mode = #tpu.pipeline_mode<synchronous>, transform_indices = @transform_6, window_bounds = array<i64: 8, 1>}, {pipeline_mode = #tpu.pipeline_mode<synchronous>, transform_indices = @transform_7, window_bounds = array<i64: 8, 1>}, {pipeline_mode = #tpu.pipeline_mode<synchronous>, transform_indices = @transform_8, window_bounds = array<i64: 8, 72>}, {pipeline_mode = #tpu.pipeline_mode<synchronous>, transform_indices = @transform_9, window_bounds = array<i64: 8, 1>}, {transform_indices = @transform_10, window_bounds = array<i64: 8, 512>}, {transform_indices = @transform_11, window_bounds = array<i64: 1, 8, 1>}, {transform_indices = @transform_12, window_bounds = array<i64: 1, 8, 1>}]} {
    %c0 = arith.constant 0 : index
    %c0_0 = arith.constant 0 : index
    %0 = vector.load %arg1[%c0, %c0_0] : memref<8x128xf32, #tpu.memory_space<vmem>>, vector<8x128xf32>
    %c0_1 = arith.constant 0 : index
    %c0_2 = arith.constant 0 : index
    %1 = vector.load %arg2[%c0_1, %c0_2] : memref<8x512xf32, #tpu.memory_space<vmem>>, vector<8x512xf32>
    %c0_3 = arith.constant 0 : index
    %c0_4 = arith.constant 0 : index
    %2 = vector.load %arg3[%c0_3, %c0_4] : memref<8x128xf32, #tpu.memory_space<vmem>>, vector<8x128xf32>
    %3 = tpu.concatenate %0, %1, %2 in 1 : vector<8x128xf32>, vector<8x512xf32>, vector<8x128xf32> -> vector<8x768xf32>
    %c0_5 = arith.constant 0 : index
    %c0_6 = arith.constant 0 : index
    %4 = vector.load %arg4[%c0_5, %c0_6] : memref<1x128xf32, #tpu.memory_space<vmem>>, vector<1x128xf32>
    %c0_7 = arith.constant 0 : index
    %c0_8 = arith.constant 0 : index
    %5 = vector.load %arg5[%c0_7, %c0_8] : memref<1x512xf32, #tpu.memory_space<vmem>>, vector<1x512xf32>
    %c0_9 = arith.constant 0 : index
    %c0_10 = arith.constant 0 : index
    %6 = vector.load %arg6[%c0_9, %c0_10] : memref<1x128xf32, #tpu.memory_space<vmem>>, vector<1x128xf32>
    %7 = tpu.concatenate %4, %5, %6 in 1 : vector<1x128xf32>, vector<1x512xf32>, vector<1x128xf32> -> vector<1x768xf32>
    %c0_11 = arith.constant 0 : index
    %c0_12 = arith.constant 0 : index
    %8 = vector.load %arg7[%c0_11, %c0_12] : memref<8x1xf32, #tpu.memory_space<vmem>>, vector<8x1xf32>
    %9 = vector.broadcast %8 : vector<8x1xf32> to vector<8x768xf32>
    %10 = arith.mulf %9, %3 : vector<8x768xf32>
    %c0_13 = arith.constant 0 : index
    %c0_14 = arith.constant 0 : index
    %11 = vector.load %arg8[%c0_13, %c0_14] : memref<8x1xf32, #tpu.memory_space<vmem>>, vector<8x1xf32>
    %12 = vector.broadcast %11 : vector<8x1xf32> to vector<8x768xf32>
    %13 = arith.addf %10, %12 : vector<8x768xf32>
    %14 = vector.broadcast %7 : vector<1x768xf32> to vector<8x768xf32>
    %15 = arith.mulf %13, %14 : vector<8x768xf32>
    %c42_i32 = arith.constant 42 : i32
    %16 = tpu.dynamic_rotate %15 by %c42_i32 dim 1 : vector<8x768xf32>, i32 -> vector<8x768xf32>
    %17 = vector.extract_strided_slice %16 {offsets = [0, 128], sizes = [8, 512], strides = [1, 1]} : vector<8x768xf32> to vector<8x512xf32>
    %c40_i32 = arith.constant 40 : i32
    %18 = tpu.dynamic_rotate %15 by %c40_i32 dim 1 : vector<8x768xf32>, i32 -> vector<8x768xf32>
    %19 = vector.extract_strided_slice %18 {offsets = [0, 128], sizes = [8, 512], strides = [1, 1]} : vector<8x768xf32> to vector<8x512xf32>
    %c38_i32 = arith.constant 38 : i32
    %20 = tpu.dynamic_rotate %15 by %c38_i32 dim 1 : vector<8x768xf32>, i32 -> vector<8x768xf32>
    %21 = vector.extract_strided_slice %20 {offsets = [0, 128], sizes = [8, 512], strides = [1, 1]} : vector<8x768xf32> to vector<8x512xf32>
    %c2_i32 = arith.constant 2 : i32
    %22 = tpu.dynamic_rotate %15 by %c2_i32 dim 1 : vector<8x768xf32>, i32 -> vector<8x768xf32>
    %23 = vector.extract_strided_slice %22 {offsets = [0, 128], sizes = [8, 512], strides = [1, 1]} : vector<8x768xf32> to vector<8x512xf32>
    %24 = vector.extract_strided_slice %15 {offsets = [0, 128], sizes = [8, 512], strides = [1, 1]} : vector<8x768xf32> to vector<8x512xf32>
    %c766_i32 = arith.constant 766 : i32
    %25 = tpu.dynamic_rotate %15 by %c766_i32 dim 1 : vector<8x768xf32>, i32 -> vector<8x768xf32>
    %26 = vector.extract_strided_slice %25 {offsets = [0, 128], sizes = [8, 512], strides = [1, 1]} : vector<8x768xf32> to vector<8x512xf32>
    %c730_i32 = arith.constant 730 : i32
    %27 = tpu.dynamic_rotate %15 by %c730_i32 dim 1 : vector<8x768xf32>, i32 -> vector<8x768xf32>
    %28 = vector.extract_strided_slice %27 {offsets = [0, 128], sizes = [8, 512], strides = [1, 1]} : vector<8x768xf32> to vector<8x512xf32>
    %c728_i32 = arith.constant 728 : i32
    %29 = tpu.dynamic_rotate %15 by %c728_i32 dim 1 : vector<8x768xf32>, i32 -> vector<8x768xf32>
    %30 = vector.extract_strided_slice %29 {offsets = [0, 128], sizes = [8, 512], strides = [1, 1]} : vector<8x768xf32> to vector<8x512xf32>
    %c726_i32 = arith.constant 726 : i32
    %31 = tpu.dynamic_rotate %15 by %c726_i32 dim 1 : vector<8x768xf32>, i32 -> vector<8x768xf32>
    %32 = vector.extract_strided_slice %31 {offsets = [0, 128], sizes = [8, 512], strides = [1, 1]} : vector<8x768xf32> to vector<8x512xf32>
    %33 = tpu.concatenate %17, %19, %21, %23, %24, %26, %28, %30, %32 in 0 : vector<8x512xf32>, vector<8x512xf32>, vector<8x512xf32>, vector<8x512xf32>, vector<8x512xf32>, vector<8x512xf32>, vector<8x512xf32>, vector<8x512xf32>, vector<8x512xf32> -> vector<72x512xf32>
    %34 = arith.truncf %33 : vector<72x512xf32> to vector<72x512xbf16>
    %c0_15 = arith.constant 0 : index
    %c0_16 = arith.constant 0 : index
    %35 = vector.load %arg9[%c0_15, %c0_16] : memref<8x72xbf16, #tpu.memory_space<vmem>>, vector<8x72xbf16>
    %cst = arith.constant dense<0.000000e+00> : vector<8x512xf32>
    %36 = tpu.matmul %35, %34, %cst {dimension_numbers = #tpu.dot_dimension_numbers<[1], [0], [0], [1], [0, 0, 1, 1], [], []>} : vector<8x72xbf16>, vector<72x512xbf16>, vector<8x512xf32> -> vector<8x512xf32>
    %c0_17 = arith.constant 0 : index
    %c0_18 = arith.constant 0 : index
    %37 = vector.load %arg10[%c0_17, %c0_18] : memref<8x1xf32, #tpu.memory_space<vmem>>, vector<8x1xf32>
    %38 = vector.broadcast %37 : vector<8x1xf32> to vector<8x512xf32>
    %39 = arith.addf %36, %38 : vector<8x512xf32>
    %cst_19 = arith.constant 0.000000e+00 : f32
    %40 = vector.broadcast %cst_19 : f32 to vector<8x512xf32>
    %41 = arith.cmpf ogt, %39, %40 : vector<8x512xf32>
    %cst_20 = arith.constant 0.00999999977 : f32
    %42 = vector.broadcast %cst_20 : f32 to vector<8x512xf32>
    %43 = arith.mulf %42, %39 : vector<8x512xf32>
    %44 = arith.select %41, %39, %43 : vector<8x512xi1>, vector<8x512xf32>
    %c0_21 = arith.constant 0 : index
    %c0_22 = arith.constant 0 : index
    %45 = vector.load %arg5[%c0_21, %c0_22] : memref<1x512xf32, #tpu.memory_space<vmem>>, vector<1x512xf32>
    %46 = vector.broadcast %45 : vector<1x512xf32> to vector<8x512xf32>
    %47 = arith.mulf %44, %46 : vector<8x512xf32>
    %c0_23 = arith.constant 0 : index
    %c0_24 = arith.constant 0 : index
    %48 = vector.load %arg11[%c0_23, %c0_24] : memref<8x512xf32, #tpu.memory_space<vmem>>, vector<8x512xf32>
    tpu.vector_store %arg11[%c0_23, %c0_24], %47 {strides = array<i32>} : memref<8x512xf32, #tpu.memory_space<vmem>>, vector<8x512xf32>,
    %cst_25 = arith.constant dense<0.000000e+00> : vector<8xf32>
    %49 = vector.multi_reduction <add>, %47, %cst_25 [1] : vector<8x512xf32> to vector<8xf32>
    %50 = vector.shape_cast %49 : vector<8xf32> to vector<8x1xf32>
    %c0_26 = arith.constant 0 : index
    %c0_27 = arith.constant 0 : index
    %c0_28 = arith.constant 0 : index
    %51 = vector.load %arg12[%c0_26, %c0_27, %c0_28] : memref<1x8x1xf32, #tpu.memory_space<vmem>>, vector<1x8x1xf32>
    %52 = vector.shape_cast %51 : vector<1x8x1xf32> to vector<8x1xf32>
    %53 = vector.shape_cast %50 : vector<8x1xf32> to vector<1x8x1xf32>
    tpu.vector_store %arg12[%c0_26, %c0_27, %c0_28], %53 {strides = array<i32>} : memref<1x8x1xf32, #tpu.memory_space<vmem>>, vector<1x8x1xf32>,
    %54 = arith.mulf %47, %47 : vector<8x512xf32>
    %cst_29 = arith.constant dense<0.000000e+00> : vector<8xf32>
    %55 = vector.multi_reduction <add>, %54, %cst_29 [1] : vector<8x512xf32> to vector<8xf32>
    %56 = vector.shape_cast %55 : vector<8xf32> to vector<8x1xf32>
    %c0_30 = arith.constant 0 : index
    %c0_31 = arith.constant 0 : index
    %c0_32 = arith.constant 0 : index
    %57 = vector.load %arg13[%c0_30, %c0_31, %c0_32] : memref<1x8x1xf32, #tpu.memory_space<vmem>>, vector<1x8x1xf32>
    %58 = vector.shape_cast %57 : vector<1x8x1xf32> to vector<8x1xf32>
    %59 = vector.shape_cast %56 : vector<8x1xf32> to vector<1x8x1xf32>
    tpu.vector_store %arg13[%c0_30, %c0_31, %c0_32], %59 {strides = array<i32>} : memref<1x8x1xf32, #tpu.memory_space<vmem>>, vector<1x8x1xf32>,
    return
  }
  func.func @transform_0(%arg0: i32) -> (i32, i32) {
    %c4_i32 = arith.constant 4 : i32
    %0 = arith.muli %arg0, %c4_i32 : i32
    %c1_i32 = arith.constant 1 : i32
    %1 = arith.subi %0, %c1_i32 : i32
    %c0_i32 = arith.constant 0 : i32
    %2 = arith.maxsi %1, %c0_i32 : i32
    %c0_i32_0 = arith.constant 0 : i32
    %c0_i32_1 = arith.constant 0 : i32
    return %c0_i32_0, %2 : i32, i32
  }
  func.func @transform_1(%arg0: i32) -> (i32, i32) {
    %c0_i32 = arith.constant 0 : i32
    %c0_i32_0 = arith.constant 0 : i32
    return %c0_i32, %arg0 : i32, i32
  }
  func.func @transform_2(%arg0: i32) -> (i32, i32) {
    %c1_i32 = arith.constant 1 : i32
    %0 = arith.addi %arg0, %c1_i32 : i32
    %c4_i32 = arith.constant 4 : i32
    %1 = arith.muli %0, %c4_i32 : i32
    %c7_i32 = arith.constant 7 : i32
    %2 = arith.minsi %1, %c7_i32 : i32
    %c0_i32 = arith.constant 0 : i32
    %c0_i32_0 = arith.constant 0 : i32
    return %c0_i32, %2 : i32, i32
  }
  func.func @transform_3(%arg0: i32) -> (i32, i32) {
    %c4_i32 = arith.constant 4 : i32
    %0 = arith.muli %arg0, %c4_i32 : i32
    %c1_i32 = arith.constant 1 : i32
    %1 = arith.subi %0, %c1_i32 : i32
    %c0_i32 = arith.constant 0 : i32
    %2 = arith.maxsi %1, %c0_i32 : i32
    %c0_i32_0 = arith.constant 0 : i32
    %c0_i32_1 = arith.constant 0 : i32
    return %c0_i32_0, %2 : i32, i32
  }
  func.func @transform_4(%arg0: i32) -> (i32, i32) {
    %c0_i32 = arith.constant 0 : i32
    %c0_i32_0 = arith.constant 0 : i32
    return %c0_i32, %arg0 : i32, i32
  }
  func.func @transform_5(%arg0: i32) -> (i32, i32) {
    %c1_i32 = arith.constant 1 : i32
    %0 = arith.addi %arg0, %c1_i32 : i32
    %c4_i32 = arith.constant 4 : i32
    %1 = arith.muli %0, %c4_i32 : i32
    %c7_i32 = arith.constant 7 : i32
    %2 = arith.minsi %1, %c7_i32 : i32
    %c0_i32 = arith.constant 0 : i32
    %c0_i32_0 = arith.constant 0 : i32
    return %c0_i32, %2 : i32, i32
  }
  func.func @transform_6(%arg0: i32) -> (i32, i32) {
    %c0_i32 = arith.constant 0 : i32
    %c0_i32_0 = arith.constant 0 : i32
    %c0_i32_1 = arith.constant 0 : i32
    return %c0_i32, %c0_i32_0 : i32, i32
  }
  func.func @transform_7(%arg0: i32) -> (i32, i32) {
    %c0_i32 = arith.constant 0 : i32
    %c0_i32_0 = arith.constant 0 : i32
    %c0_i32_1 = arith.constant 0 : i32
    return %c0_i32, %c0_i32_0 : i32, i32
  }
  func.func @transform_8(%arg0: i32) -> (i32, i32) {
    %c0_i32 = arith.constant 0 : i32
    %c0_i32_0 = arith.constant 0 : i32
    %c0_i32_1 = arith.constant 0 : i32
    return %c0_i32, %c0_i32_0 : i32, i32
  }
  func.func @transform_9(%arg0: i32) -> (i32, i32) {
    %c0_i32 = arith.constant 0 : i32
    %c0_i32_0 = arith.constant 0 : i32
    %c0_i32_1 = arith.constant 0 : i32
    return %c0_i32, %c0_i32_0 : i32, i32
  }
  func.func @transform_10(%arg0: i32) -> (i32, i32) {
    %c0_i32 = arith.constant 0 : i32
    %c0_i32_0 = arith.constant 0 : i32
    return %c0_i32, %arg0 : i32, i32
  }
  func.func @transform_11(%arg0: i32) -> (i32, i32, i32) {
    %c0_i32 = arith.constant 0 : i32
    %c0_i32_0 = arith.constant 0 : i32
    %c0_i32_1 = arith.constant 0 : i32
    return %arg0, %c0_i32, %c0_i32_0 : i32, i32, i32
  }
  func.func @transform_12(%arg0: i32) -> (i32, i32, i32) {
    %c0_i32 = arith.constant 0 : i32
    %c0_i32_0 = arith.constant 0 : i32
    %c0_i32_1 = arith.constant 0 : i32
    return %arg0, %c0_i32, %c0_i32_0 : i32, i32, i32
  }
}

module attributes {stable_mosaic.version = 11 : i64} {
  func.func @_pass3_kernel(%arg0: i32, %arg1: memref<4x512xf32, #tpu.memory_space<vmem>>, %arg2: memref<8x512xf32, #tpu.memory_space<vmem>>, %arg3: memref<8x4xf32, #tpu.memory_space<vmem>>, %arg4: memref<8x1xf32, #tpu.memory_space<vmem>>, %arg5: memref<8x1xf32, #tpu.memory_space<vmem>>, %arg6: memref<8x1xf32, #tpu.memory_space<vmem>>, %arg7: memref<8x512xf32, #tpu.memory_space<vmem>>) attributes {dimension_semantics = [#tpu.dimension_semantics<parallel>], iteration_bounds = array<i64: 2>, scalar_prefetch = 0 : i64, scratch_operands = 0 : i64, tpu.core_type = #tpu.core_type<tc>, window_params = [{transform_indices = @transform_0, window_bounds = array<i64: 4, 512>}, {transform_indices = @transform_1, window_bounds = array<i64: 8, 512>}, {pipeline_mode = #tpu.pipeline_mode<synchronous>, transform_indices = @transform_2, window_bounds = array<i64: 8, 4>}, {pipeline_mode = #tpu.pipeline_mode<synchronous>, transform_indices = @transform_3, window_bounds = array<i64: 8, 1>}, {pipeline_mode = #tpu.pipeline_mode<synchronous>, transform_indices = @transform_4, window_bounds = array<i64: 8, 1>}, {pipeline_mode = #tpu.pipeline_mode<synchronous>, transform_indices = @transform_5, window_bounds = array<i64: 8, 1>}, {transform_indices = @transform_6, window_bounds = array<i64: 8, 512>}]} {
    %c0 = arith.constant 0 : index
    %c0_0 = arith.constant 0 : index
    %0 = vector.load %arg3[%c0, %c0_0] : memref<8x4xf32, #tpu.memory_space<vmem>>, vector<8x4xf32>
    %c0_1 = arith.constant 0 : index
    %c0_2 = arith.constant 0 : index
    %1 = vector.load %arg1[%c0_1, %c0_2] : memref<4x512xf32, #tpu.memory_space<vmem>>, vector<4x512xf32>
    %cst = arith.constant dense<0.000000e+00> : vector<8x512xf32>
    %2 = tpu.matmul %0, %1, %cst {dimension_numbers = #tpu.dot_dimension_numbers<[1], [0], [0], [1], [0, 0, 1, 1], [], []>} : vector<8x4xf32>, vector<4x512xf32>, vector<8x512xf32> -> vector<8x512xf32>
    %c0_3 = arith.constant 0 : index
    %c0_4 = arith.constant 0 : index
    %3 = vector.load %arg4[%c0_3, %c0_4] : memref<8x1xf32, #tpu.memory_space<vmem>>, vector<8x1xf32>
    %4 = vector.broadcast %3 : vector<8x1xf32> to vector<8x512xf32>
    %5 = arith.addf %2, %4 : vector<8x512xf32>
    %cst_5 = arith.constant 0.000000e+00 : f32
    %6 = vector.broadcast %cst_5 : f32 to vector<8x512xf32>
    %7 = arith.cmpf ogt, %5, %6 : vector<8x512xf32>
    %cst_6 = arith.constant 0.00999999977 : f32
    %8 = vector.broadcast %cst_6 : f32 to vector<8x512xf32>
    %9 = arith.mulf %8, %5 : vector<8x512xf32>
    %10 = arith.select %7, %5, %9 : vector<8x512xi1>, vector<8x512xf32>
    %c0_7 = arith.constant 0 : index
    %c0_8 = arith.constant 0 : index
    %11 = vector.load %arg5[%c0_7, %c0_8] : memref<8x1xf32, #tpu.memory_space<vmem>>, vector<8x1xf32>
    %c0_9 = arith.constant 0 : index
    %c0_10 = arith.constant 0 : index
    %12 = vector.load %arg2[%c0_9, %c0_10] : memref<8x512xf32, #tpu.memory_space<vmem>>, vector<8x512xf32>
    %13 = vector.broadcast %11 : vector<8x1xf32> to vector<8x512xf32>
    %14 = arith.mulf %13, %12 : vector<8x512xf32>
    %15 = arith.addf %10, %14 : vector<8x512xf32>
    %c0_11 = arith.constant 0 : index
    %c0_12 = arith.constant 0 : index
    %16 = vector.load %arg6[%c0_11, %c0_12] : memref<8x1xf32, #tpu.memory_space<vmem>>, vector<8x1xf32>
    %17 = vector.broadcast %16 : vector<8x1xf32> to vector<8x512xf32>
    %18 = arith.addf %15, %17 : vector<8x512xf32>
    %c0_13 = arith.constant 0 : index
    %c0_14 = arith.constant 0 : index
    %19 = vector.load %arg7[%c0_13, %c0_14] : memref<8x512xf32, #tpu.memory_space<vmem>>, vector<8x512xf32>
    tpu.vector_store %arg7[%c0_13, %c0_14], %18 {strides = array<i32>} : memref<8x512xf32, #tpu.memory_space<vmem>>, vector<8x512xf32>,
    return
  }
  func.func @transform_0(%arg0: i32) -> (i32, i32) {
    %c0_i32 = arith.constant 0 : i32
    %c0_i32_0 = arith.constant 0 : i32
    return %c0_i32, %arg0 : i32, i32
  }
  func.func @transform_1(%arg0: i32) -> (i32, i32) {
    %c0_i32 = arith.constant 0 : i32
    %c0_i32_0 = arith.constant 0 : i32
    return %c0_i32, %arg0 : i32, i32
  }
  func.func @transform_2(%arg0: i32) -> (i32, i32) {
    %c0_i32 = arith.constant 0 : i32
    %c0_i32_0 = arith.constant 0 : i32
    %c0_i32_1 = arith.constant 0 : i32
    return %c0_i32, %c0_i32_0 : i32, i32
  }
  func.func @transform_3(%arg0: i32) -> (i32, i32) {
    %c0_i32 = arith.constant 0 : i32
    %c0_i32_0 = arith.constant 0 : i32
    %c0_i32_1 = arith.constant 0 : i32
    return %c0_i32, %c0_i32_0 : i32, i32
  }
  func.func @transform_4(%arg0: i32) -> (i32, i32) {
    %c0_i32 = arith.constant 0 : i32
    %c0_i32_0 = arith.constant 0 : i32
    %c0_i32_1 = arith.constant 0 : i32
    return %c0_i32, %c0_i32_0 : i32, i32
  }
  func.func @transform_5(%arg0: i32) -> (i32, i32) {
    %c0_i32 = arith.constant 0 : i32
    %c0_i32_0 = arith.constant 0 : i32
    %c0_i32_1 = arith.constant 0 : i32
    return %c0_i32, %c0_i32_0 : i32, i32
  }
  func.func @transform_6(%arg0: i32) -> (i32, i32) {
    %c0_i32 = arith.constant 0 : i32
    %c0_i32_0 = arith.constant 0 : i32
    return %c0_i32, %arg0 : i32, i32
  }
}

</mosaic_0001>

<bundles_post_ra>
// kernel: res_context_block.5
= control target key start
LH: loop header
LB: loop body
LE: loop exit
PB: predicated region body
PF: predicated region fallthrough
CT: control target
= control target key end

     0   :  { %s635_s21 = smov 0   ;;  %s675_s0 = inlined_call_operand.vmem [shape: f32[4,1024], index: 0, kind: input, shape index: {}]   ;;  %s676_s1 = inlined_call_operand.vmem [shape: f32[8,1024], index: 1, kind: input, shape index: {}]   ;;  %s677_s2 = inlined_call_operand.vmem [shape: f32[8,4], index: 2, kind: input, shape index: {}]   ;;  %s678_s3 = inlined_call_operand.vmem [shape: f32[8,1], index: 3, kind: input, shape index: {}]   ;;  %s679_s4 = inlined_call_operand.vmem [shape: f32[8,1], index: 4, kind: input, shape index: {}]   ;;  %s680_s5 = inlined_call_operand.vmem [shape: f32[8,1], index: 5, kind: input, shape index: {}]   ;;  %s681_s6 = inlined_call_operand.vmem [shape: f32[8,1024], index: 6, kind: output, shape index: {}]  }
   0x1 LB: > { %s557_s22 = sadd.s32 4294967295, %s596_s21   ;;  %p561_p0 = scmp.ge.s32.totalorder %s596_s21, 1  ;;  %s596_s21 = sphi %s635_s21, %s16_s21  }
   0x2   : > { %p224_p1 = scmp.lt.s32.totalorder %s596_s21, 3 }
   0x4   : > { %p225_p2 = pnand %p561_p0, %p224_p1 }
   0x5   : > { %s562_s23 = sshll.u32 (!%p225_p2), %s557_s22, 2  ;;  %v598_v0 = vmov (!%p225_p2), 0.0   ;;  %v280_v1 = vld [vmem:[%s678_s3] sm:$0xff] (!%p225_p2)  ;;  %v599_v3 = vmov (!%p225_p2), 0   ;;  %vm294_vm0 = vcmask (!%p225_p2), 1043456   ;;  %vm290_vm1 = vcmask (!%p225_p2), 31744  }
   0x6   : > { %228 = sbr.rel (%p225_p2) target bundleno = 244 (0xf4), region = 44  ;;  %p260_p3 = scmp.lt.s32.totalorder (!%p225_p2), %s562_s23, 7  ;;  %367 = vmatprep.mubr.f32.mxu0 (!%p225_p2), %v598_v0  ;;  %438 = vmatprep.mubr.f32.mxu1 (!%p225_p2), %v598_v0  ;;  %v475_v2 = vld [vmem:[%s680_s5] sm:$0xff] (!%p225_p2) }
   0x7   : > { %586 = vset.pattern.permute.xlu0 (!%p225_p2), %v599_v3  ;;  %587 = vset.pattern.permute.xlu1 (!%p225_p2), %v599_v3  ;;  %v457_v4 = vld [vmem:[%s679_s4] sm:$0xff] (!%p225_p2) }
   0x8   : > { %283 = vperm.xlu0 (!%p225_p2), %586, %v280_v1   ;;  %478 = vperm.xlu1 (!%p225_p2), %587, %v475_v2   ;;  %v277_v9 = vld [vmem:[%s677_s2] sm:$0xff] (!%p225_p2) }
   0xc   : > { %464 = vperm.xlu0 (!%p225_p2), %586, %v457_v4  }
   0xd   : > { %s683_s23 = smov (!%p260_p3, %s562_s23), 7 }
   0xe   : > { %s563_s30 = sshll.u32 %s683_s23, 2  ;;  %s565_s12 = sshll.u32 %s683_s23, 3 }
   0xf   : > { %s263_s9 = scalar_lea.vmem %s675_s0, %s563_s30  ;;  %s269_s15 = scalar_lea.vmem %s676_s1, %s565_s12 }
  0x10   : > { %v278_v5 = vld [vmem:[%s263_s9] sm:$0xff]  ;;  %v279_v6 = vld [vmem:[%s263_s9 + $0x8] sm:$0xff]  ;;  %v460_v13 = vld [vmem:[%s269_s15 + $0x10] sm:$0xff]  ;;  %s275_s18 = scalar_lea.vmem %s681_s6, %s565_s12 }
  0x11   : > { %v288_v7 = vcombine.high %v278_v5, %v278_v5  ;;  %v289_v8 = vcombine.high %v279_v6, %v279_v6  ;;  %v458_v12 = vld [vmem:[%s269_s15] sm:$0xff]  ;;  %v459_v20 = vld [vmem:[%s269_s15 + $0x8] sm:$0xff]  ;;  %v461_v21 = vld [vmem:[%s269_s15 + $0x18] sm:$0xff] }
  0x13   : > { %568 = vmatprep.subr.msk.mxu0 %vm294_vm0, %v288_v7  ;;  %571 = vmatprep.subr.msk.mxu1 %vm294_vm0, %v289_v8 }
  0x14   : > { %569 = vmatpush1.msk.msra.mxu0 %vm294_vm0, %v278_v5  ;;  %572 = vmatpush1.msk.msra.mxu1 %vm294_vm0, %v279_v6 }
  0x15   : > { %570 = vmatmul.mubr.msk.f32.vlgmr.msra.gmra.mrb[0].mxu0 %vm290_vm1, %v277_v9  ;;  %573 = vmatmul.mubr.msk.f32.vlgmr.msra.gmra.mrb[0].mxu1 %vm290_vm1, %v277_v9 }
  0x87   : > { %v284_v10 = vpop.permute.xlu0 %283  ;;  %v479_v34 = vpop.permute.xlu1 %478 }
  0x8b   : > { %v465_v11 = vpop.permute.xlu0 %464 }
  0x8c   : > { %v467_v22 = vmul.f32 %v465_v11, %v458_v12  ;;  %v469_v23 = vmul.f32 %v465_v11, %v460_v13  ;;  %v468_v30 = vmul.f32 %v465_v11, %v459_v20  ;;  %v470_v31 = vmul.f32 %v465_v11, %v461_v21 }
  0xe8   : > { %v369_v14 = vpop.f32.mrb[0].mxu0  ;;  %v440_v15 = vpop.f32.mrb[0].mxu1 }
  0xe9   : > { %v370_v16 = vadd.f32 %v369_v14, %v284_v10  ;;  %v441_v17 = vadd.f32 %v440_v15, %v284_v10  ;;  %v371_v18 = vpop.f32.mrb[1].mxu0  ;;  %v442_v19 = vpop.f32.mrb[1].mxu1 }
  0xea   : > { %v372_v24 = vadd.f32 %v371_v18, %v284_v10  ;;  %v443_v25 = vadd.f32 %v442_v19, %v284_v10 }
  0xeb   : > { %vm445_vm2 = vcmp.gt.f32.partialorder %v370_v16, 0.0  ;;  %v449_v26 = vmul.f32 0.01, %v370_v16  ;;  %vm447_vm3 = vcmp.gt.f32.partialorder %v441_v17, 0.0  ;;  %v451_v27 = vmul.f32 0.01, %v441_v17 }
  0xec   : > { %vm446_vm4 = vcmp.gt.f32.partialorder %v372_v24, 0.0  ;;  %v450_v28 = vmul.f32 0.01, %v372_v24  ;;  %vm448_vm5 = vcmp.gt.f32.partialorder %v443_v25, 0.0  ;;  %v452_v29 = vmul.f32 0.01, %v443_v25 }
  0xed   : > { %v453_v32 = vsel %vm445_vm2, %v370_v16, %v449_v26  ;;  %v455_v33 = vsel %vm447_vm3, %v441_v17, %v451_v27 }
  0xee   : > { %v454_v35 = vsel %vm446_vm4, %v372_v24, %v450_v28  ;;  %v456_v36 = vsel %vm448_vm5, %v443_v25, %v452_v29  ;;  %v471_v37 = vadd.f32 %v467_v22, %v453_v32  ;;  %v473_v38 = vadd.f32 %v469_v23, %v455_v33 }
  0xef   : > { %v472_v39 = vadd.f32 %v468_v30, %v454_v35  ;;  %v474_v40 = vadd.f32 %v470_v31, %v456_v36 }
  0xf0   : > { %v481_v41 = vadd.f32 %v479_v34, %v471_v37  ;;  %v483_v43 = vadd.f32 %v479_v34, %v473_v38 }
  0xf1   : > { %v482_v42 = vadd.f32 %v479_v34, %v472_v39  ;;  %v484_v44 = vadd.f32 %v479_v34, %v474_v40 }
  0xf2   : > { %485 = vst [vmem:[%s275_s18] sm:$0xff] %v481_v41  ;;  %487 = vst [vmem:[%s275_s18 + $0x10] sm:$0xff] %v483_v43 }
  0xf3   : > { %486 = vst [vmem:[%s275_s18 + $0x8] sm:$0xff] %v482_v42  ;;  %488 = vst [vmem:[%s275_s18 + $0x18] sm:$0xff] %v484_v44 }
  0xf4 PF: > { %s16_s21 = sadd.s32 1, %s596_s21  }
  0xf5   : > { %p13_p4 = scmp.ge.s32.totalorder %s16_s21, 4  }
  0xf7   :  { %15 = sbr.rel (!%p13_p4) target bundleno = 1 (0x1), region = 77 }

// kernel: res_context_block.4
= control target key start
LH: loop header
LB: loop body
LE: loop exit
PB: predicated region body
PF: predicated region fallthrough
CT: control target
= control target key end

     0   :  { %s1426_s21 = smov 0   ;;  %s1616_s0 = inlined_call_operand.vmem [shape: f32[8,1024], index: 0, kind: input, shape index: {}, may-alias: {0,1,2}]   ;;  %s1617_s1 = inlined_call_operand.vmem [shape: f32[8,1024], index: 1, kind: input, shape index: {}, may-alias: {0,1,2}]   ;;  %s1618_s2 = inlined_call_operand.vmem [shape: f32[8,1024], index: 2, kind: input, shape index: {}, may-alias: {0,1,2}]   ;;  %s1619_s3 = inlined_call_operand.vmem [shape: f32[1,1024], index: 3, kind: input, shape index: {}, may-alias: {3,4,5}]   ;;  %s1620_s4 = inlined_call_operand.vmem [shape: f32[1,1024], index: 4, kind: input, shape index: {}, may-alias: {3,4,5}]   ;;  %s1621_s5 = inlined_call_operand.vmem [shape: f32[1,1024], index: 5, kind: input, shape index: {}, may-alias: {3,4,5}]   ;;  %s1622_s6 = inlined_call_operand.vmem [shape: f32[8,1], index: 6, kind: input, shape index: {}]   ;;  %s1623_s7 = inlined_call_operand.vmem [shape: f32[8,1], index: 7, kind: input, shape index: {}]   ;;  %s1624_s8 = inlined_call_operand.vmem [shape: bf16[8,72], index: 8, kind: input, shape index: {}]   ;;  %s1625_s9 = inlined_call_operand.vmem [shape: f32[8,1], index: 9, kind: input, shape index: {}]   ;;  %s1626_s10 = inlined_call_operand.vmem [shape: f32[8,1024], index: 10, kind: output, shape index: {0}]   ;;  %s1627_s11 = inlined_call_operand.vmem [shape: f32[2,8,1], index: 11, kind: output, shape index: {1}]   ;;  %s1628_s12 = inlined_call_operand.vmem [shape: f32[2,8,1], index: 12, kind: output, shape index: {2}]  }
   0x1 LB: > { %s1432_s22 = sadd.s32 4294967295, %s1350_s21   ;;  %p1186_p0 = scmp.ge.s32.totalorder %s1350_s21, 1  ;;  %s1350_s21 = sphi %s1426_s21, %s23_s21  }
   0x2   : > { %p476_p1 = scmp.lt.s32.totalorder %s1350_s21, 3 }
   0x4   : > { %p477_p2 = pnand %p1186_p0, %p476_p1 }
   0x5   : > { %v662_v0 = vld [vmem:[%s1622_s6] sm:$0xff] (!%p477_p2)  ;;  %v1352_v1 = vmov (!%p477_p2), 0   ;;  %s1443_s27 = sshll.u32 (!%p477_p2), %s1432_s22, 2  ;;  %v642_v3 = vlaneseq (!%p477_p2)  ;;  %s1355_s17 = smov (!%p477_p2), 38   ;;  %vm869_vm8 = vcmask (!%p477_p2), 1043456   ;;  %vm865_vm9 = vcmask (!%p477_p2), 588800  }
   0x6   : > { %480 = sbr.rel (%p477_p2) target bundleno = 684 (0x2ac), region = 60  ;;  %1263 = vset.pattern.permute.xlu0 (!%p477_p2), %v1352_v1  ;;  %914 = vmatprep.mubr.bf16.mxu0 (!%p477_p2), %v1352_v1  ;;  %v674_v2 = vld [vmem:[%s1623_s7] sm:$0xff] (!%p477_p2)  ;;  %s1188_s28 = sadd.s32 (!%p477_p2), 4294967295, %s1443_s27  ;;  %vm989_vm14 = vcmask (!%p477_p2), 7168  }
   0x7   : > { %665 = vperm.xlu0 (!%p477_p2), %1263, %v662_v0   ;;  %955 = vmatprep.mubr.bf16.mxu1 (!%p477_p2), %v1352_v1  ;;  %p562_p3 = scmp.gt.s32.totalorder (!%p477_p2), %s1188_s28, 0  ;;  %p1189_p4 = scmp.lt.s32.totalorder (!%p477_p2), %s1188_s28, 7  ;;  %v643_v4 = vshrl.u32 (!%p477_p2), %v642_v3, 7  ;;  %v859_v51 = vld [vmem:[%s1625_s9] sm:$0xff] (!%p477_p2)  ;;  %v1523_v52 = vand.u32 (!%p477_p2), 127, %v642_v3 }
   0x8   : > { %p573_p5 = scmp.lt.s32.totalorder (!%p477_p2), %s1443_s27, 7  ;;  %s1241_s13 = sadd.s32 (!%p477_p2), 4, %s1443_s27 }
   0x9   : > { %v644_v5 = vsub.s32 (!%p477_p2), 0, %v643_v4  ;;  %v648_v6 = vsub.s32 (!%p477_p2), 1, %v643_v4  ;;  %v652_v7 = vsub.s32 (!%p477_p2), 2, %v643_v4  ;;  %v656_v17 = vsub.s32 (!%p477_p2), 3, %v643_v4  ;;  %p1483_p6 = scmp.lt.s32.totalorder (!%p477_p2), %s1241_s13, 7  ;;  %s1356_s23 = smov (!%p477_p2), 2  }
   0xa   : > { %vm728_vm0 = vcmp.lt.s32.totalorder (!%p477_p2), %v1523_v52, 42  ;;  %vm743_vm1 = vcmp.lt.s32.totalorder (!%p477_p2), %v1523_v52, 40  ;;  %vm758_vm2 = vcmp.lt.s32.totalorder (!%p477_p2), %v1523_v52, 38  ;;  %vm773_vm3 = vcmp.lt.s32.totalorder (!%p477_p2), %v1523_v52, 2  ;;  %p623_p7 = scmp.lt.s32.totalorder (!%p477_p2), %s1432_s22, 1 }
   0xb   : > { %677 = vperm.xlu0 (!%p477_p2), %1263, %v674_v2   ;;  %vm788_vm4 = vcmp.lt.s32.totalorder (!%p477_p2), %v1523_v52, 126  ;;  %vm818_vm5 = vcmp.lt.s32.totalorder (!%p477_p2), %v1523_v52, 88  ;;  %vm803_vm6 = vcmp.lt.s32.totalorder (!%p477_p2), %v1523_v52, 90  ;;  %vm833_vm7 = vcmp.lt.s32.totalorder (!%p477_p2), %v1523_v52, 86  ;;  %v858_v52 = vld [vmem:[%s1624_s8] sm:$0xf] (!%p477_p2) }
   0xd   : > { %s1631_s28 = smov (!%p562_p3, %s1188_s28), 0  ;;  %s1635_s13 = smov (!%p1483_p6, %s1241_s13), 7 }
   0xe   : > { %s1448_s29 = scalar_select %p573_p5, %s1443_s27, 7 }
   0xf   : > { %s1633_s28 = smov (!%p1189_p4, %s1631_s28), 7  ;;  %s1353_s27 = smov 42  }
  0x10   : > { %s604_s14 = scalar_lea.vmem %s1620_s4, %s1448_s29  ;;  %s1196_s15 = sshll.u32 %s1448_s29, 3 }
  0x11   : > { %s1194_s16 = sshll.u32 %s1633_s28, 3  ;;  %v639_v8 = vld [vmem:[%s604_s14] sm:$0xf]  ;;  %s576_s19 = scalar_lea.vmem %s1617_s1, %s1196_s15 }
  0x12   : > { %s567_s24 = scalar_lea.vmem %s1616_s0, %s1194_s16  ;;  %v1467_v9 = vrot.slane %v639_v8, %v644_v5  ;;  %v1469_v10 = vrot.slane %v639_v8, %v648_v6  ;;  %v1471_v11 = vrot.slane %v639_v8, %v652_v7  ;;  %v633_v12 = vld [vmem:[%s576_s19] sm:$0xff]  ;;  %v634_v15 = vld [vmem:[%s576_s19 + $0x8] sm:$0xff]  ;;  %v635_v16 = vld [vmem:[%s576_s19 + $0x10] sm:$0xff]  ;;  %s596_s30 = scalar_lea.vmem %s1619_s3, %s1633_s28  ;;  %v1481_v27 = vrot.slane %v639_v8, %v656_v17 }
  0x13   : > { %v632_v14 = vld [vmem:[%s567_s24] sm:$0xff]  ;;  %v636_v21 = vld [vmem:[%s576_s19 + $0x18] sm:$0xff]  ;;  %s1637_s13 = smov (!%p1483_p6, %s1635_s13), 7  ;;  %s1354_s14 = smov 40  }
  0x14   : > { %v693_v18 = vrot.slane %v1467_v9, %v644_v5  ;;  %v697_v19 = vrot.slane %v1469_v10, %v644_v5  ;;  %v701_v20 = vrot.slane %v1471_v11, %v644_v5  ;;  %v1218_v28 = vld [vmem:[%s596_s30] ss:$0 sm:$0xff]  ;;  %v705_v39 = vrot.slane %v1481_v27, %v644_v5  ;;  %s1201_s16 = sshll.u32 %s1637_s13, 3  ;;  %s612_s26 = scalar_lea.vmem %s1621_s5, %s1637_s13 }
  0x15   : > { %s585_s20 = scalar_lea.vmem %s1618_s2, %s1201_s16  ;;  %v1219_v47 = vld [vmem:[%s612_s26] ss:$0 sm:$0xff]  ;;  %s1357_s30 = smov 126  }
  0x16   : > { %v637_v43 = vld [vmem:[%s585_s20] sm:$0xff]  ;;  %s1358_s28 = smov 88   ;;  %s1359_s13 = smov 90  }
  0x17   : > { %s1639_s22 = smov (!%p623_p7, %s1432_s22), 1 }
  0x18   : > { %s1216_s29 = sshll.u32 %s1639_s22, 3 }
  0x19   : > { %s626_s25 = scalar_lea.vmem %s1627_s11, %s1216_s29 }
  0x86   : > { %v666_v13 = vpop.permute.xlu0 %665 }
  0x87   : > { %v668_v22 = vmul.f32 %v666_v13, %v632_v14  ;;  %v669_v23 = vmul.f32 %v666_v13, %v633_v12  ;;  %v670_v24 = vmul.f32 %v666_v13, %v634_v15  ;;  %v671_v25 = vmul.f32 %v666_v13, %v635_v16 }
  0x88   : > { %v672_v33 = vmul.f32 %v666_v13, %v636_v21  ;;  %v673_v44 = vmul.f32 %v666_v13, %v637_v43 }
  0x8a   : > { %v678_v26 = vpop.permute.xlu0 %677 }
  0x8b   : > { %v680_v29 = vadd.f32 %v678_v26, %v668_v22  ;;  %v681_v30 = vadd.f32 %v678_v26, %v669_v23  ;;  %v682_v31 = vadd.f32 %v678_v26, %v670_v24  ;;  %v683_v32 = vadd.f32 %v678_v26, %v671_v25 }
  0x8c   : > { %v684_v38 = vadd.f32 %v678_v26, %v672_v33  ;;  %v685_v46 = vadd.f32 %v678_v26, %v673_v44 }
  0x8d   : > { %v1487_v34 = vmul.f32 %v693_v18, %v681_v30  ;;  %v1489_v35 = vmul.f32 %v697_v19, %v682_v31  ;;  %v1491_v36 = vmul.f32 %v701_v20, %v683_v32  ;;  %v710_v37 = vmul.f32 %v1218_v28, %v680_v29 }
  0x8e   : > { %v1499_v42 = vmul.f32 %v705_v39, %v684_v38  ;;  %v715_v48 = vmul.f32 %v1219_v47, %v685_v46 }
  0x8f   : > { %v1264_v40 = vpack.i.bf16 %v1489_v35, %v1487_v34  ;;  %v1274_v41 = vpack.i.bf16 %v1491_v36, %v710_v37  ;;  %v1304_v45 = vpack.i.bf16 %v1491_v36, %v1489_v35 }
  0x90   : > { %v1309_v49 = vpack.i.bf16 %v1499_v42, %v1487_v34  ;;  %v1339_v50 = vpack.i.bf16 %v1499_v42, %v1491_v36 }
  0x91   : > { %1265 = vrot.lane.b32.xlu1 %v1264_v40, %s1353_s27  ;;  %1275 = vrot.lane.b32.xlu0 %v1274_v41, %s1353_s27 }
  0x95   : > { %1270 = vrot.lane.b32.xlu1 %v1264_v40, %s1354_s14  ;;  %724 = vrot.lane.b32.xlu0 %v1499_v42, %s1353_s27  ;;  %s1360_s27 = smov 86  }
  0x99   : > { %1280 = vrot.lane.b32.xlu1 %v1274_v41, %s1354_s14  ;;  %1285 = vrot.lane.b32.xlu0 %v1264_v40, %s1355_s17 }
  0x9d   : > { %741 = vrot.lane.b32.xlu1 %v1499_v42, %s1354_s14  ;;  %1295 = vrot.lane.b32.xlu0 %v1274_v41, %s1355_s17 }
  0xa1   : > { %1290 = vrot.lane.b32.xlu1 %v1264_v40, %s1356_s23  ;;  %756 = vrot.lane.b32.xlu0 %v1499_v42, %s1355_s17 }
  0xa5   : > { %1300 = vrot.lane.b32.xlu1 %v1274_v41, %s1356_s23  ;;  %1305 = vrot.lane.b32.xlu0 %v1304_v45, %s1357_s30 }
  0xa9   : > { %771 = vrot.lane.b32.xlu1 %v1499_v42, %s1356_s23  ;;  %786 = vrot.lane.b32.xlu0 %v715_v48, %s1357_s30  ;;  %s621_s23 = scalar_lea.vmem %s1626_s10, %s1196_s15 }
  0xad   : > { %1310 = vrot.lane.b32.xlu1 %v1309_v49, %s1357_s30  ;;  %1320 = vrot.lane.b32.xlu0 %v1304_v45, %s1358_s28 }
  0xb1   : > { %1315 = vrot.lane.b32.xlu1 %v1304_v45, %s1359_s13  ;;  %1330 = vrot.lane.b32.xlu0 %v1309_v49, %s1358_s28 }
  0xb5   : > { %1325 = vrot.lane.b32.xlu1 %v1309_v49, %s1359_s13  ;;  %816 = vrot.lane.b32.xlu0 %v715_v48, %s1358_s28  ;;  %s630_s28 = scalar_lea.vmem %s1628_s12, %s1216_s29 }
  0xb9   : > { %801 = vrot.lane.b32.xlu1 %v715_v48, %s1359_s13  ;;  %1340 = vrot.lane.b32.xlu0 %v1339_v50, %s1360_s27 }
  0xbd   : > { %1335 = vrot.lane.b32.xlu1 %v1264_v40, %s1360_s27  ;;  %862 = vperm.xlu0 %1263, %v859_v51  }
  0xc1   : > { %831 = vrot.lane.b32.xlu1 %v715_v48, %s1360_s27 }
 0x103   : > { %v1266_v53 = vpop.permute.xlu1 %1265  ;;  %v1276_v54 = vpop.permute.xlu0 %1275 }
 0x104   : > { %v1268_v55 = vunpack.i.h.bf16 %v1266_v53  ;;  %v1267_v56 = vunpack.i.l.bf16 %v1266_v53  ;;  %v1277_v61 = vunpack.i.l.bf16 %v1276_v54  ;;  %v1278_v5 = vunpack.i.h.bf16 %v1276_v54 }
 0x106   : > { %v731_v62 = vsel %vm728_vm0, %v1267_v56, %v1268_v55  ;;  %v732_v6 = vsel %vm728_vm0, %v1277_v61, %v1267_v56  ;;  %v730_v18 = vsel %vm728_vm0, %v1268_v55, %v1278_v5 }
 0x107   : > { %v1271_v57 = vpop.permute.xlu1 %1270  ;;  %v725_v58 = vpop.permute.xlu0 %724 }
 0x108   : > { %v1273_v59 = vunpack.i.h.bf16 %v1271_v57  ;;  %v1272_v60 = vunpack.i.l.bf16 %v1271_v57  ;;  %v729_v15 = vsel %vm728_vm0, %v1278_v5, %v725_v58 }
 0x10a   : > { %v746_v63 = vsel %vm743_vm1, %v1272_v60, %v1273_v59 }
 0x10b   : > { %v1281_v0 = vpop.permute.xlu1 %1280  ;;  %v1286_v1 = vpop.permute.xlu0 %1285  ;;  %v839_v2 = vpack.c.bf16 %v746_v63, %v731_v62 }
 0x10c   : > { %v1283_v3 = vunpack.i.h.bf16 %v1281_v0  ;;  %v1282_v4 = vunpack.i.l.bf16 %v1281_v0  ;;  %v1288_v19 = vunpack.i.h.bf16 %v1286_v1  ;;  %v1287_v20 = vunpack.i.l.bf16 %v1286_v1 }
 0x10d   : > { %882 = vmatprep.subr.bf16.mxu0 %v839_v2 }
 0x10e   : > { %v747_v7 = vsel %vm743_vm1, %v1282_v4, %v1272_v60  ;;  %v745_v14 = vsel %vm743_vm1, %v1273_v59, %v1283_v3  ;;  %v761_v28 = vsel %vm758_vm2, %v1287_v20, %v1288_v19 }
 0x10f   : > { %v742_v8 = vpop.permute.xlu1 %741  ;;  %v1296_v12 = vpop.permute.xlu0 %1295  ;;  %v838_v13 = vpack.c.bf16 %v747_v7, %v732_v6  ;;  %v840_v21 = vpack.c.bf16 %v745_v14, %v730_v18 }
 0x110   : > { %v744_v16 = vsel %vm743_vm1, %v1283_v3, %v742_v8  ;;  %v1297_v26 = vunpack.i.l.bf16 %v1296_v12  ;;  %v1298_v40 = vunpack.i.h.bf16 %v1296_v12 }
 0x111   : > { %883 = vmatpush1.bf16.msra.mxu0 %v838_v13  ;;  %v841_v17 = vpack.c.bf16 %v744_v16, %v729_v15 }
 0x112   : > { %v762_v41 = vsel %vm758_vm2, %v1297_v26, %v1287_v20  ;;  %v760_v54 = vsel %vm758_vm2, %v1288_v19, %v1298_v40 }
 0x113   : > { %v1291_v22 = vpop.permute.xlu1 %1290  ;;  %v757_v23 = vpop.permute.xlu0 %756  ;;  %923 = vmatprep.subr.bf16.mxu1 %v841_v17 }
 0x114   : > { %v1293_v24 = vunpack.i.h.bf16 %v1291_v22  ;;  %v1292_v25 = vunpack.i.l.bf16 %v1291_v22  ;;  %924 = vmatpush1.bf16.msra.mxu1 %v840_v21  ;;  %v759_v50 = vsel %vm758_vm2, %v1298_v40, %v757_v23 }
 0x116   : > { %v776_v29 = vsel %vm773_vm3, %v1292_v25, %v1293_v24 }
 0x117   : > { %v1301_v30 = vpop.permute.xlu1 %1300  ;;  %v1306_v31 = vpop.permute.xlu0 %1305  ;;  %v843_v32 = vpack.c.bf16 %v776_v29, %v761_v28 }
 0x118   : > { %v1303_v33 = vunpack.i.h.bf16 %v1301_v30  ;;  %v1302_v37 = vunpack.i.l.bf16 %v1301_v30  ;;  %v1308_v38 = vunpack.i.h.bf16 %v1306_v31  ;;  %v1307_v39 = vunpack.i.l.bf16 %v1306_v31 }
 0x119   : > { %884 = vmatprep.subr.bf16.mxu0 %v843_v32 }
 0x11a   : > { %v777_v43 = vsel %vm773_vm3, %v1302_v37, %v1292_v25  ;;  %v791_v44 = vsel %vm788_vm4, %v1307_v39, %v1308_v38  ;;  %v775_v49 = vsel %vm773_vm3, %v1293_v24, %v1303_v33 }
 0x11b   : > { %v772_v45 = vpop.permute.xlu1 %771  ;;  %v787_v46 = vpop.permute.xlu0 %786  ;;  %v842_v47 = vpack.c.bf16 %v777_v43, %v762_v41  ;;  %v847_v48 = vpack.c.bf16 %v791_v44, %v1489_v35  ;;  %v844_v55 = vpack.c.bf16 %v775_v49, %v760_v54 }
 0x11c   : > { %v774_v51 = vsel %vm773_vm3, %v1303_v33, %v772_v45 }
 0x11d   : > { %v845_v53 = vpack.c.bf16 %v774_v51, %v759_v50  ;;  %885 = vmatpush1.bf16.msra.mxu0 %v842_v47 }
 0x11e   : > { %886 = vmatprep.subr.bf16.mxu0 %v847_v48 }
 0x11f   : > { %v1311_v56 = vpop.permute.xlu1 %1310  ;;  %v1321_v57 = vpop.permute.xlu0 %1320  ;;  %925 = vmatprep.subr.bf16.mxu1 %v845_v53 }
 0x120   : > { %v1313_v35 = vunpack.i.h.bf16 %v1311_v56  ;;  %v1312_v58 = vunpack.i.l.bf16 %v1311_v56  ;;  %926 = vmatpush1.bf16.msra.mxu1 %v844_v55  ;;  %v1323_v59 = vunpack.i.h.bf16 %v1321_v57  ;;  %v1322_v60 = vunpack.i.l.bf16 %v1321_v57 }
 0x122   : > { %v792_v61 = vsel %vm788_vm4, %v1312_v58, %v1307_v39  ;;  %v789_v62 = vsel %vm788_vm4, %v1313_v35, %v787_v46  ;;  %v790_v63 = vsel %vm788_vm4, %v1308_v38, %v1313_v35  ;;  %v821_v12 = vsel %vm818_vm5, %v1322_v60, %v1323_v59 }
 0x123   : > { %v1316_v0 = vpop.permute.xlu1 %1315  ;;  %v1331_v1 = vpop.permute.xlu0 %1330  ;;  %v846_v2 = vpack.c.bf16 %v792_v61, %v1487_v34  ;;  %v849_v3 = vpack.c.bf16 %v789_v62, %v1499_v42  ;;  %v848_v4 = vpack.c.bf16 %v790_v63, %v1491_v36 }
 0x124   : > { %v1318_v5 = vunpack.i.h.bf16 %v1316_v0  ;;  %v1317_v6 = vunpack.i.l.bf16 %v1316_v0  ;;  %v1332_v7 = vunpack.i.l.bf16 %v1331_v1  ;;  %v1333_v36 = vunpack.i.h.bf16 %v1331_v1 }
 0x125   : > { %887 = vmatpush1.bf16.msra.mxu0 %v846_v2  ;;  %927 = vmatprep.subr.bf16.mxu1 %v849_v3 }
 0x126   : > { %928 = vmatpush1.bf16.msra.mxu1 %v848_v4  ;;  %v806_v8 = vsel %vm803_vm6, %v1317_v6, %v1318_v5  ;;  %v822_v17 = vsel %vm818_vm5, %v1332_v7, %v1322_v60  ;;  %v820_v28 = vsel %vm818_vm5, %v1323_v59, %v1333_v36 }
 0x127   : > { %v1326_v13 = vpop.permute.xlu1 %1325  ;;  %v817_v34 = vpop.permute.xlu0 %816  ;;  %v851_v14 = vpack.c.bf16 %v821_v12, %v806_v8 }
 0x128   : > { %v1328_v42 = vunpack.i.h.bf16 %v1326_v13  ;;  %v1327_v15 = vunpack.i.l.bf16 %v1326_v13  ;;  %v819_v22 = vsel %vm818_vm5, %v1333_v36, %v817_v34 }
 0x129   : > { %888 = vmatprep.subr.bf16.mxu0 %v851_v14 }
 0x12a   : > { %v807_v16 = vsel %vm803_vm6, %v1327_v15, %v1317_v6  ;;  %v805_v21 = vsel %vm803_vm6, %v1318_v5, %v1328_v42 }
 0x12b   : > { %v802_v18 = vpop.permute.xlu1 %801  ;;  %v1341_v19 = vpop.permute.xlu0 %1340  ;;  %v850_v20 = vpack.c.bf16 %v822_v17, %v807_v16  ;;  %v852_v29 = vpack.c.bf16 %v820_v28, %v805_v21 }
 0x12c   : > { %v804_v23 = vsel %vm803_vm6, %v1328_v42, %v802_v18  ;;  %v1343_v24 = vunpack.i.h.bf16 %v1341_v19  ;;  %v1342_v25 = vunpack.i.l.bf16 %v1341_v19 }
 0x12d   : > { %v853_v26 = vpack.c.bf16 %v819_v22, %v804_v23  ;;  %889 = vmatpush1.bf16.msra.mxu0 %v850_v20 }
 0x12e   : > { %v835_v33 = vsel %vm833_vm7, %v1342_v25, %v1343_v24 }
 0x12f   : > { %v1336_v30 = vpop.permute.xlu1 %1335  ;;  %929 = vmatprep.subr.bf16.mxu1 %v853_v26  ;;  %v856_v43 = vpack.c.bf16 %v835_v33, %v835_v33 }
 0x130   : > { %v1338_v31 = vunpack.i.h.bf16 %v1336_v30  ;;  %v1337_v32 = vunpack.i.l.bf16 %v1336_v30  ;;  %930 = vmatpush1.bf16.msra.mxu1 %v852_v29 }
 0x131   : > { %v877_v47 = vsel %vm869_vm8, %v856_v43, 0 }
 0x132   : > { %v836_v37 = vsel %vm833_vm7, %v1338_v31, %v1342_v25  ;;  %v837_v38 = vsel %vm833_vm7, %v1337_v32, %v1338_v31 }
 0x133   : > { %v832_v39 = vpop.permute.xlu1 %831  ;;  %v855_v40 = vpack.c.bf16 %v836_v37, %v836_v37  ;;  %v854_v41 = vpack.c.bf16 %v837_v38, %v837_v38 }
 0x134   : > { %v834_v44 = vsel %vm833_vm7, %v1343_v24, %v832_v39 }
 0x135   : > { %v857_v45 = vpack.c.bf16 %v834_v44, %v834_v44  ;;  %1220 = vmatprep.subr.msk.bf16.mxu0 %vm869_vm8, %v855_v40  ;;  %v871_v46 = vsel %vm869_vm8, %v854_v41, 0 }
 0x136   : > { %891 = vmatpush1.bf16.msra.mxu0 %v871_v46 }
 0x137   : > { %1222 = vmatprep.subr.msk.bf16.mxu1 %vm869_vm8, %v857_v45 }
 0x138   : > { %932 = vmatpush1.bf16.msra.mxu1 %v877_v47 }
 0x139   : > { %1221 = vmatmul.mubr.msk.bf16.vlgmr.msra.gmra.mrb[0].mxu0 %vm865_vm9, %v858_v52 }
 0x13b   : > { %1223 = vmatmul.mubr.msk.bf16.vlgmr.msra.gmra.mrb[0].mxu1 %vm865_vm9, %v858_v52 }
 0x13c   : > { %v863_v48 = vpop.permute.xlu0 %862 }
 0x20c   : > { %v916_v49 = vpop.f32.mrb[0].mxu0 }
 0x20d   : > { %v917_v50 = vadd.f32 %v916_v49, %v863_v48  ;;  %v918_v51 = vpop.f32.mrb[1].mxu0 }
 0x20e   : > { %v919_v53 = vadd.f32 %v918_v51, %v863_v48  ;;  %v920_v54 = vpop.f32.mrb[2].mxu0  ;;  %v957_v55 = vpop.f32.mrb[0].mxu1 }
 0x20f   : > { %vm964_vm10 = vcmp.gt.f32.partialorder %v917_v50, 0.0  ;;  %v968_v56 = vmul.f32 0.01, %v917_v50  ;;  %v958_v57 = vadd.f32 %v957_v55, %v863_v48  ;;  %v921_v35 = vpop.f32.mrb[3].mxu0  ;;  %v959_v58 = vpop.f32.mrb[1].mxu1 }
 0x210   : > { %vm965_vm11 = vcmp.gt.f32.partialorder %v919_v53, 0.0  ;;  %v969_v59 = vmul.f32 0.01, %v919_v53  ;;  %v960_v60 = vadd.f32 %v959_v58, %v863_v48  ;;  %v961_v61 = vpop.f32.mrb[2].mxu1 }
 0x211   : > { %v972_v62 = vsel %vm964_vm10, %v917_v50, %v968_v56  ;;  %vm966_vm12 = vcmp.gt.f32.partialorder %v958_v57, 0.0  ;;  %v970_v63 = vmul.f32 0.01, %v958_v57  ;;  %v962_v0 = vpop.f32.mrb[3].mxu1 }
 0x212   : > { %v976_v1 = vmul.f32 %v972_v62, %v1467_v9  ;;  %v973_v2 = vsel %vm965_vm11, %v919_v53, %v969_v59  ;;  %vm967_vm13 = vcmp.gt.f32.partialorder %v960_v60, 0.0  ;;  %v971_v3 = vmul.f32 0.01, %v960_v60 }
 0x213   : > { %v977_v4 = vmul.f32 %v973_v2, %v1469_v10  ;;  %v974_v5 = vsel %vm966_vm12, %v958_v57, %v970_v63 }
 0x214   : > { %980 = vst [vmem:[%s621_s23] sm:$0xff] %v976_v1  ;;  %v978_v6 = vmul.f32 %v974_v5, %v1471_v11  ;;  %v975_v7 = vsel %vm967_vm13, %v960_v60, %v971_v3  ;;  %v991_v8 = vmul.f32 %v976_v1, %v976_v1 }
 0x215   : > { %981 = vst [vmem:[%s621_s23 + $0x8] sm:$0xff] %v977_v4  ;;  %v979_v12 = vmul.f32 %v975_v7, %v1481_v27  ;;  %v984_v13 = vadd.f32 %v977_v4, %v976_v1  ;;  %v992_v34 = vmul.f32 %v977_v4, %v977_v4 }
 0x216   : > { %982 = vst [vmem:[%s621_s23 + $0x10] sm:$0xff] %v978_v6  ;;  %v993_v9 = vmul.f32 %v978_v6, %v978_v6 }
 0x217   : > { %v985_v14 = vadd.f32 %v984_v13, %v978_v6  ;;  %983 = vst [vmem:[%s621_s23 + $0x18] sm:$0xff] %v979_v12  ;;  %v995_v42 = vadd.f32 %v992_v34, %v991_v8  ;;  %v994_v10 = vmul.f32 %v979_v12, %v979_v12 }
 0x219   : > { %v986_v15 = vadd.f32 %v985_v14, %v979_v12  ;;  %v996_v36 = vadd.f32 %v995_v42, %v993_v9 }
 0x21b   : > { %987 = vadd.xlane.f32.xlu1 %v986_v15  ;;  %v997_v16 = vadd.f32 %v996_v36, %v994_v10 }
 0x21d   : > { %998 = vadd.xlane.f32.xlu0 %v997_v16 }
 0x2a8   : > { %v988_v11 = vpop.xlane.xlu1 %987 }
 0x2a9   : > { %990 = vst.msk [vmem:[%s626_s25] sm:$0xff] %vm989_vm14, %v988_v11 }
 0x2aa   : > { %v999_v27 = vpop.xlane.xlu0 %998 }
 0x2ab   : > { %1000 = vst.msk [vmem:[%s630_s28] sm:$0xff] %vm989_vm14, %v999_v27 }
 0x2ac PF: > { %s23_s21 = sadd.s32 1, %s1350_s21  }
 0x2ad   : > { %p20_p8 = scmp.ge.s32.totalorder %s23_s21, 4  }
 0x2af   :  { %22 = sbr.rel (!%p20_p8) target bundleno = 1 (0x1), region = 129 }

// kernel: res_context_block.3
= control target key start
LH: loop header
LB: loop body
LE: loop exit
PB: predicated region body
PF: predicated region fallthrough
CT: control target
= control target key end

     0   :  { %s1674_s21 = smov 0   ;;  %s1943_s0 = inlined_call_operand.vmem [shape: f32[4,1024], index: 0, kind: input, shape index: {}, may-alias: {0,1,2}]   ;;  %s1944_s1 = inlined_call_operand.vmem [shape: f32[4,1024], index: 1, kind: input, shape index: {}, may-alias: {0,1,2}]   ;;  %s1945_s2 = inlined_call_operand.vmem [shape: f32[4,1024], index: 2, kind: input, shape index: {}, may-alias: {0,1,2}]   ;;  %s1946_s3 = inlined_call_operand.vmem [shape: f32[1,1024], index: 3, kind: input, shape index: {}, may-alias: {3,4,5}]   ;;  %s1947_s4 = inlined_call_operand.vmem [shape: f32[1,1024], index: 4, kind: input, shape index: {}, may-alias: {3,4,5}]   ;;  %s1948_s5 = inlined_call_operand.vmem [shape: f32[1,1024], index: 5, kind: input, shape index: {}, may-alias: {3,4,5}]   ;;  %s1949_s6 = inlined_call_operand.vmem [shape: f32[8,4], index: 6, kind: input, shape index: {}]   ;;  %s1950_s7 = inlined_call_operand.vmem [shape: f32[8,1], index: 7, kind: input, shape index: {}]   ;;  %s1951_s8 = inlined_call_operand.vmem [shape: bf16[8,72], index: 8, kind: input, shape index: {}]   ;;  %s1952_s9 = inlined_call_operand.vmem [shape: f32[8,1], index: 9, kind: input, shape index: {}]   ;;  %s1953_s10 = inlined_call_operand.vmem [shape: f32[8,1024], index: 10, kind: output, shape index: {0}]   ;;  %s1954_s11 = inlined_call_operand.vmem [shape: f32[2,8,1], index: 11, kind: output, shape index: {1}]   ;;  %s1955_s12 = inlined_call_operand.vmem [shape: f32[2,8,1], index: 12, kind: output, shape index: {2}]  }
   0x1 LB: > { %s1680_s22 = sadd.s32 4294967295, %s1597_s21   ;;  %p1420_p0 = scmp.ge.s32.totalorder %s1597_s21, 1  ;;  %s1597_s21 = sphi %s1674_s21, %s23_s21  }
   0x2   : > { %p476_p1 = scmp.lt.s32.totalorder %s1597_s21, 3 }
   0x4   : > { %p477_p2 = pnand %p1420_p0, %p476_p1 }
   0x5   : > { %s1685_s23 = sshll.u32 (!%p477_p2), %s1680_s22, 2  ;;  %v1599_v0 = vmov (!%p477_p2), 0.0   ;;  %v665_v1 = vld [vmem:[%s1950_s7] sm:$0xff] (!%p477_p2)  ;;  %v1600_v2 = vmov (!%p477_p2), 0   ;;  %vm675_vm0 = vcmask (!%p477_p2), 1043456   ;;  %vm671_vm1 = vcmask (!%p477_p2), 31744  }
   0x6   : > { %480 = sbr.rel (%p477_p2) target bundleno = 782 (0x30e), region = 60  ;;  %p573_p3 = scmp.lt.s32.totalorder (!%p477_p2), %s1685_s23, 7  ;;  %825 = vmatprep.mubr.f32.mxu1 (!%p477_p2), %v1599_v0  ;;  %754 = vmatprep.mubr.f32.mxu0 (!%p477_p2), %v1599_v0  ;;  %v664_v6 = vld [vmem:[%s1949_s6] sm:$0xff] (!%p477_p2)  ;;  %v644_v10 = vlaneseq (!%p477_p2) }
   0x7   : > { %s1422_s24 = sadd.s32 (!%p477_p2), 4294967295, %s1685_s23  ;;  %1507 = vset.pattern.permute.xlu0 (!%p477_p2), %v1600_v2  ;;  %1588 = vset.pattern.permute.xlu1 (!%p477_p2), %v1600_v2  ;;  %s1484_s15 = sadd.s32 (!%p477_p2), 4, %s1685_s23  ;;  %v1094_v63 = vld [vmem:[%s1952_s9] sm:$0xff] (!%p477_p2) }
   0x8   : > { %p562_p4 = scmp.gt.s32.totalorder (!%p477_p2), %s1422_s24, 0  ;;  %p1423_p5 = scmp.lt.s32.totalorder (!%p477_p2), %s1422_s24, 7  ;;  %668 = vperm.xlu0 (!%p477_p2), %1507, %v665_v1   ;;  %v645_v11 = vshrl.u32 (!%p477_p2), %v644_v10, 7 }
   0x9   : > { %p580_p6 = scmp.lt.s32.totalorder (!%p477_p2), %s1484_s15, 7  ;;  %s1602_s19 = smov (!%p477_p2), 21  }
   0xa   : > { %v654_v12 = vsub.s32 (!%p477_p2), 2, %v645_v11  ;;  %v1732_v15 = vsub.s32 (!%p477_p2), 0, %v645_v11  ;;  %v650_v20 = vsub.s32 (!%p477_p2), 1, %v645_v11  ;;  %s1603_s20 = smov (!%p477_p2), 1   ;;  %s1606_s25 = smov (!%p477_p2), 127   ;;  %v658_v48 = vsub.s32 (!%p477_p2), 3, %v645_v11 }
   0xb   : > { %s1607_s26 = smov (!%p477_p2), 108   ;;  %p623_p7 = scmp.lt.s32.totalorder (!%p477_p2), %s1680_s22, 1 }
   0xd   : > { %s1693_s27 = scalar_select %p573_p3, %s1685_s23, 7 }
   0xe   : > { %s563_s28 = scalar_select %p562_p4, %s1422_s24, 0 }
   0xf   : > { %s1430_s29 = sshll.u32 %s1693_s27, 2  ;;  %s1959_s15 = smov (!%p580_p6, %s1484_s15), 7 }
  0x10   : > { %s576_s14 = scalar_lea.vmem %s1944_s1, %s1430_s29  ;;  %s1957_s28 = smov (!%p1423_p5, %s563_s28), 7 }
  0x11   : > { %v634_v3 = vld [vmem:[%s576_s14 + $0x8] sm:$0xff]  ;;  %v633_v4 = vld [vmem:[%s576_s14] sm:$0xff]  ;;  %s1428_s18 = sshll.u32 %s1957_s28, 2  ;;  %s1961_s15 = smov (!%p580_p6, %s1959_s15), 7 }
  0x12   : > { %1455 = vmatprep.subr.msk.mxu1 %vm675_vm0, %v634_v3  ;;  %v638_v5 = vcombine.high %v633_v4, %v633_v4  ;;  %1452 = vmatprep.subr.msk.mxu0 %vm675_vm0, %v633_v4  ;;  %s567_s23 = scalar_lea.vmem %s1943_s0, %s1428_s18  ;;  %v639_v8 = vcombine.high %v634_v3, %v634_v3  ;;  %s1435_s24 = sshll.u32 %s1961_s15, 2 }
  0x13   : > { %v632_v7 = vld [vmem:[%s567_s23] sm:$0xf]  ;;  %s585_s29 = scalar_lea.vmem %s1945_s2, %s1435_s24  ;;  %s604_s14 = scalar_lea.vmem %s1947_s4, %s1693_s27 }
  0x14   : > { %1456 = vmatpush1.msk.msra.mxu1 %vm675_vm0, %v638_v5  ;;  %1453 = vmatpush1.msk.msra.mxu0 %vm675_vm0, %v632_v7  ;;  %v635_v9 = vld [vmem:[%s585_s29] sm:$0xf]  ;;  %s596_s18 = scalar_lea.vmem %s1946_s3, %s1957_s28  ;;  %s1601_s28 = smov 20  }
  0x15   : > { %1457 = vmatmul.mubr.msk.f32.vlgmr.msra.gmra.mrb[0].mxu1 %vm671_vm1, %v664_v6  ;;  %1454 = vmatmul.mubr.msk.f32.vlgmr.msra.gmra.mrb[0].mxu0 %vm671_vm1, %v664_v6  ;;  %v641_v13 = vld [vmem:[%s604_s14] sm:$0xf]  ;;  %s1604_s23 = smov 19   ;;  %s1605_s24 = smov 109  }
  0x16   : > { %1148 = vmatprep.mubr.bf16.mxu1 %v1600_v2  ;;  %896 = vmatprep.mubr.f32.mxu0 %v1599_v0  ;;  %v1734_v16 = vrot.slane %v641_v13, %v654_v12  ;;  %v1461_v27 = vld [vmem:[%s596_s18] ss:$0 sm:$0xff]  ;;  %v1745_v30 = vrot.slane %v641_v13, %v650_v20  ;;  %v1753_v38 = vrot.slane %v641_v13, %v1732_v15  ;;  %s1608_s29 = smov 107   ;;  %s612_s14 = scalar_lea.vmem %s1948_s5, %s1961_s15 }
  0x17   : > { %1458 = vmatprep.subr.msk.mxu0 %vm675_vm0, %v635_v9  ;;  %v1775_v51 = vrot.slane %v641_v13, %v658_v48  ;;  %v1462_v59 = vld [vmem:[%s612_s14] ss:$0 sm:$0xff]  ;;  %s1963_s22 = smov (!%p623_p7, %s1680_s22), 1 }
  0x18   : > { %1459 = vmatpush1.msk.msra.mxu0 %vm675_vm0, %v639_v8  ;;  %v936_v22 = vrot.slane %v1734_v16, %v1732_v15  ;;  %v932_v37 = vrot.slane %v1745_v30, %v1732_v15  ;;  %v928_v44 = vrot.slane %v1753_v38, %v1732_v15  ;;  %v1821_v8 = vand.u32 127, %v644_v10 }
  0x19   : > { %1460 = vmatmul.mubr.msk.f32.vlgmr.msra.gmra.mrb[2].mxu0 %vm671_vm1, %v664_v6  ;;  %v940_v53 = vrot.slane %v1775_v51, %v1732_v15  ;;  %vm1100_vm1 = vcmask 588800  }
  0x1a   : > { %1189 = vmatprep.mubr.bf16.mxu0 %v1600_v2  ;;  %vm963_vm8 = vcmp.lt.s32.totalorder %v1821_v8, 21  ;;  %vm978_vm9 = vcmp.lt.s32.totalorder %v1821_v8, 20  ;;  %vm1008_vm10 = vcmp.lt.s32.totalorder %v1821_v8, 1  ;;  %vm993_vm11 = vcmp.lt.s32.totalorder %v1821_v8, 19 }
  0x1b   : > { %vm1023_vm12 = vcmp.lt.s32.totalorder %v1821_v8, 127  ;;  %vm1053_vm13 = vcmp.lt.s32.totalorder %v1821_v8, 108  ;;  %vm1038_vm14 = vcmp.lt.s32.totalorder %v1821_v8, 109  ;;  %vm1068_vm15 = vcmp.lt.s32.totalorder %v1821_v8, 107 }
  0x87   : > { %v1730_v14 = vpop.permute.xlu0 %668 }
  0xe8   : > { %v827_v17 = vpop.f32.mrb[0].mxu1  ;;  %v756_v21 = vpop.f32.mrb[0].mxu0 }
  0xe9   : > { %v829_v18 = vpop.f32.mrb[1].mxu1  ;;  %v828_v23 = vadd.f32 %v827_v17, %v1730_v14  ;;  %v757_v24 = vadd.f32 %v756_v21, %v1730_v14  ;;  %v758_v26 = vpop.f32.mrb[1].mxu0 }
  0xea   : > { %v830_v19 = vadd.f32 %v829_v18, %v1730_v14  ;;  %v759_v34 = vadd.f32 %v758_v26, %v1730_v14 }
  0xeb   : > { %vm903_vm3 = vcmp.gt.f32.partialorder %v757_v24, 0.0  ;;  %v909_v28 = vmul.f32 0.01, %v757_v24  ;;  %v911_v32 = vmul.f32 0.01, %v828_v23  ;;  %vm905_vm4 = vcmp.gt.f32.partialorder %v828_v23, 0.0 }
  0xec   : > { %vm906_vm2 = vcmp.gt.f32.partialorder %v830_v19, 0.0  ;;  %v912_v25 = vmul.f32 0.01, %v830_v19  ;;  %v898_v36 = vpop.f32.mrb[2].mxu0  ;;  %v910_v42 = vmul.f32 0.01, %v759_v34 }
  0xed   : > { %v915_v33 = vsel %vm903_vm3, %v757_v24, %v909_v28  ;;  %v900_v39 = vpop.f32.mrb[3].mxu0  ;;  %v917_v41 = vsel %vm905_vm4, %v828_v23, %v911_v32  ;;  %vm904_vm5 = vcmp.gt.f32.partialorder %v759_v34, 0.0  ;;  %v899_v50 = vadd.f32 %v898_v36, %v1730_v14 }
  0xee   : > { %v918_v29 = vsel %vm906_vm2, %v830_v19, %v912_v25  ;;  %v945_v35 = vmul.f32 %v1461_v27, %v915_v33  ;;  %v1758_v43 = vmul.f32 %v932_v37, %v917_v41  ;;  %v916_v45 = vsel %vm904_vm5, %v759_v34, %v910_v42 }
  0xef   : > { %v1747_v31 = vmul.f32 %v936_v22, %v918_v29  ;;  %v1764_v46 = vmul.f32 %v928_v44, %v916_v45  ;;  %v913_v52 = vmul.f32 0.01, %v899_v50  ;;  %vm907_vm6 = vcmp.gt.f32.partialorder %v899_v50, 0.0 }
  0xf0   : > { %v901_v56 = vadd.f32 %v900_v39, %v1730_v14  ;;  %vm1223_vm5 = vcmask 7168  }
  0xf1   : > { %v1513_v40 = vpack.i.bf16 %v1747_v31, %v945_v35  ;;  %v1533_v47 = vpack.i.bf16 %v1747_v31, %v1758_v43  ;;  %v1543_v49 = vpack.i.bf16 %v1758_v43, %v1764_v46  ;;  %v919_v54 = vsel %vm907_vm6, %v899_v50, %v913_v52 }
  0xf2   : > { %v1782_v55 = vmul.f32 %v940_v53, %v919_v54  ;;  %v914_v57 = vmul.f32 0.01, %v901_v56  ;;  %vm908_vm7 = vcmp.gt.f32.partialorder %v901_v56, 0.0 }
  0xf3   : > { %1514 = vrot.lane.b32.xlu0 %v1513_v40, %s1601_s28  ;;  %1509 = vrot.lane.b32.xlu1 %v1513_v40, %s1602_s19 }
  0xf4   : > { %v1568_v58 = vpack.i.bf16 %v1782_v55, %v1764_v46  ;;  %v920_v60 = vsel %vm908_vm7, %v901_v56, %v914_v57  ;;  %v1583_v62 = vpack.i.bf16 %v1782_v55, %v1747_v31 }
  0xf5   : > { %v950_v61 = vmul.f32 %v1462_v59, %v920_v60 }
  0xf7   : > { %1524 = vrot.lane.b32.xlu0 %v1513_v40, %s1603_s20  ;;  %1519 = vrot.lane.b32.xlu1 %v1513_v40, %s1604_s23 }
  0xfb   : > { %1534 = vrot.lane.b32.xlu0 %v1533_v47, %s1605_s24  ;;  %1529 = vrot.lane.b32.xlu1 %v1533_v47, %s1606_s25 }
  0xff   : > { %1544 = vrot.lane.b32.xlu0 %v1543_v49, %s1602_s19  ;;  %1539 = vrot.lane.b32.xlu1 %v1533_v47, %s1607_s26 }
 0x103   : > { %1559 = vrot.lane.b32.xlu0 %v1543_v49, %s1603_s20  ;;  %1549 = vrot.lane.b32.xlu1 %v1543_v49, %s1601_s28 }
 0x107   : > { %1564 = vrot.lane.b32.xlu0 %v1543_v49, %s1608_s29  ;;  %1554 = vrot.lane.b32.xlu1 %v1543_v49, %s1604_s23 }
 0x10b   : > { %976 = vrot.lane.b32.xlu0 %v1782_v55, %s1601_s28  ;;  %959 = vrot.lane.b32.xlu1 %v1782_v55, %s1602_s19  ;;  %s1449_s28 = sshll.u32 %s1693_s27, 3  ;;  %s1450_s27 = sshll.u32 %s1963_s22, 3 }
 0x10c   : > { %s630_s13 = scalar_lea.vmem %s1955_s12, %s1450_s27 }
 0x10f   : > { %1006 = vrot.lane.b32.xlu0 %v1782_v55, %s1603_s20  ;;  %991 = vrot.lane.b32.xlu1 %v1782_v55, %s1604_s23  ;;  %s621_s23 = scalar_lea.vmem %s1953_s10, %s1449_s28 }
 0x113   : > { %1569 = vrot.lane.b32.xlu0 %v1568_v58, %s1606_s25  ;;  %1579 = vrot.lane.b32.xlu1 %v1568_v58, %s1607_s26 }
 0x117   : > { %1574 = vrot.lane.b32.xlu0 %v1568_v58, %s1605_s24  ;;  %1021 = vrot.lane.b32.xlu1 %v950_v61, %s1606_s25 }
 0x11b   : > { %1036 = vrot.lane.b32.xlu0 %v950_v61, %s1605_s24  ;;  %1051 = vrot.lane.b32.xlu1 %v950_v61, %s1607_s26  ;;  %s626_s26 = scalar_lea.vmem %s1954_s11, %s1450_s27 }
 0x11f   : > { %1066 = vrot.lane.b32.xlu0 %v950_v61, %s1608_s29  ;;  %1584 = vrot.lane.b32.xlu1 %v1583_v62, %s1608_s29 }
 0x123   : > { %1097 = vperm.xlu1 %1588, %v1094_v63  }
 0x165   : > { %v1515_v0 = vpop.permute.xlu0 %1514  ;;  %v1510_v1 = vpop.permute.xlu1 %1509 }
 0x166   : > { %v1516_v13 = vunpack.i.l.bf16 %v1515_v0  ;;  %v1511_v18 = vunpack.i.l.bf16 %v1510_v1  ;;  %v1517_v34 = vunpack.i.h.bf16 %v1515_v0  ;;  %v1512_v37 = vunpack.i.h.bf16 %v1510_v1 }
 0x169   : > { %v1810_v2 = vpop.permute.xlu0 %1524  ;;  %v1812_v3 = vpop.permute.xlu1 %1519 }
 0x16a   : > { %v1521_v19 = vunpack.i.l.bf16 %v1812_v3  ;;  %v1526_v35 = vunpack.i.l.bf16 %v1810_v2  ;;  %v1522_v54 = vunpack.i.h.bf16 %v1812_v3  ;;  %v1527_v58 = vunpack.i.h.bf16 %v1810_v2 }
 0x16d   : > { %v1814_v4 = vpop.permute.xlu0 %1534  ;;  %v1816_v5 = vpop.permute.xlu1 %1529 }
 0x16e   : > { %v1532_v22 = vunpack.i.h.bf16 %v1816_v5  ;;  %v1531_v23 = vunpack.i.l.bf16 %v1816_v5 }
 0x170   : > { %v1026_v53 = vsel %vm1023_vm12, %v1531_v23, %v1532_v22 }
 0x171   : > { %v1545_v6 = vpop.permute.xlu0 %1544  ;;  %v1818_v7 = vpop.permute.xlu1 %1539  ;;  %v1082_v63 = vpack.c.bf16 %v1026_v53, %v1758_v43  ;;  %v1537_v43 = vunpack.i.h.bf16 %v1814_v4 }
 0x172   : > { %v1546_v9 = vunpack.i.l.bf16 %v1545_v6  ;;  %v1547_v14 = vunpack.i.h.bf16 %v1545_v6  ;;  %v1542_v3 = vunpack.i.h.bf16 %v1818_v7  ;;  %v1541_v2 = vunpack.i.l.bf16 %v1818_v7 }
 0x174   : > { %v967_v24 = vsel %vm963_vm8, %v1511_v18, %v1546_v9  ;;  %v966_v33 = vsel %vm963_vm8, %v1546_v9, %v1547_v14  ;;  %v965_v56 = vsel %vm963_vm8, %v1547_v14, %v1512_v37  ;;  %v1056_v7 = vsel %vm1053_vm13, %v1541_v2, %v1542_v3 }
 0x175   : > { %v1560_v11 = vpop.permute.xlu0 %1559  ;;  %v1550_v12 = vpop.permute.xlu1 %1549 }
 0x176   : > { %v1552_v15 = vunpack.i.h.bf16 %v1550_v12  ;;  %v1551_v17 = vunpack.i.l.bf16 %v1550_v12  ;;  %v1562_v10 = vunpack.i.h.bf16 %v1560_v11  ;;  %v1561_v20 = vunpack.i.l.bf16 %v1560_v11 }
 0x177   : > { %v1536_v12 = vunpack.i.l.bf16 %v1814_v4 }
 0x178   : > { %v982_v21 = vsel %vm978_vm9, %v1516_v13, %v1551_v17  ;;  %v981_v27 = vsel %vm978_vm9, %v1551_v17, %v1552_v15  ;;  %v1011_v41 = vsel %vm1008_vm10, %v1561_v20, %v1562_v10  ;;  %v1012_v42 = vsel %vm1008_vm10, %v1526_v35, %v1561_v20 }
 0x179   : > { %v1834_v25 = vpop.permute.xlu0 %1564  ;;  %v1555_v26 = vpop.permute.xlu1 %1554  ;;  %v1073_v28 = vpack.c.bf16 %v982_v21, %v967_v24  ;;  %v1074_v36 = vpack.c.bf16 %v981_v27, %v966_v33  ;;  %v980_v44 = vsel %vm978_vm9, %v1552_v15, %v1517_v34  ;;  %v1010_v6 = vsel %vm1008_vm10, %v1562_v10, %v1527_v58 }
 0x17a   : > { %v1557_v29 = vunpack.i.h.bf16 %v1555_v26  ;;  %v1556_v32 = vunpack.i.l.bf16 %v1555_v26  ;;  %v1075_v59 = vpack.c.bf16 %v980_v44, %v965_v56  ;;  %v1041_v24 = vsel %vm1038_vm14, %v1536_v12, %v1537_v43 }
 0x17b   : > { %1116 = vmatprep.subr.bf16.mxu1 %v1074_v36 }
 0x17c   : > { %v997_v39 = vsel %vm993_vm11, %v1521_v19, %v1556_v32  ;;  %v996_v40 = vsel %vm993_vm11, %v1556_v32, %v1557_v29  ;;  %1117 = vmatpush1.bf16.msra.mxu1 %v1073_v28  ;;  %v995_v60 = vsel %vm993_vm11, %v1557_v29, %v1522_v54  ;;  %v1086_v29 = vpack.c.bf16 %v1056_v7, %v1041_v24 }
 0x17d   : > { %v977_v45 = vpop.permute.xlu0 %976  ;;  %v960_v47 = vpop.permute.xlu1 %959  ;;  %v1078_v48 = vpack.c.bf16 %v1011_v41, %v996_v40  ;;  %v1077_v49 = vpack.c.bf16 %v1012_v42, %v997_v39  ;;  %v1079_v11 = vpack.c.bf16 %v1010_v6, %v995_v60  ;;  %v1093_v60 = vld [vmem:[%s1951_s8] sm:$0xf] }
 0x17e   : > { %v979_v50 = vsel %vm978_vm9, %v1517_v34, %v977_v45  ;;  %v964_v52 = vsel %vm963_vm8, %v1512_v37, %v960_v47 }
 0x17f   : > { %v1076_v57 = vpack.c.bf16 %v979_v50, %v964_v52  ;;  %1118 = vmatprep.subr.bf16.mxu1 %v1078_v48 }
 0x180   : > { %1119 = vmatpush1.bf16.msra.mxu1 %v1077_v49 }
 0x181   : > { %v1007_v61 = vpop.permute.xlu0 %1006  ;;  %v992_v62 = vpop.permute.xlu1 %991  ;;  %1157 = vmatprep.subr.bf16.mxu0 %v1076_v57  ;;  %1120 = vmatprep.subr.bf16.mxu1 %v1082_v63 }
 0x182   : > { %v1009_v0 = vsel %vm1008_vm10, %v1527_v58, %v1007_v61  ;;  %v994_v1 = vsel %vm993_vm11, %v1522_v54, %v992_v62  ;;  %1158 = vmatpush1.bf16.msra.mxu0 %v1075_v59 }
 0x183   : > { %v1080_v9 = vpack.c.bf16 %v1009_v0, %v994_v1 }
 0x185   : > { %v1570_v13 = vpop.permute.xlu0 %1569  ;;  %v1580_v14 = vpop.permute.xlu1 %1579  ;;  %1159 = vmatprep.subr.bf16.mxu0 %v1080_v9 }
 0x186   : > { %v1572_v15 = vunpack.i.h.bf16 %v1570_v13  ;;  %v1571_v17 = vunpack.i.l.bf16 %v1570_v13  ;;  %1160 = vmatpush1.bf16.msra.mxu0 %v1079_v11  ;;  %v1581_v19 = vunpack.i.l.bf16 %v1580_v14  ;;  %v1582_v32 = vunpack.i.h.bf16 %v1580_v14 }
 0x188   : > { %v1027_v18 = vsel %vm1023_vm12, %v1571_v17, %v1531_v23  ;;  %v1025_v4 = vsel %vm1023_vm12, %v1532_v22, %v1572_v15  ;;  %v1567_v23 = vunpack.i.h.bf16 %v1834_v25  ;;  %v1566_v22 = vunpack.i.l.bf16 %v1834_v25 }
 0x189   : > { %v1081_v10 = vpack.c.bf16 %v1027_v18, %v1764_v46  ;;  %v1575_v20 = vpop.permute.xlu0 %1574  ;;  %v1022_v21 = vpop.permute.xlu1 %1021  ;;  %v1083_v46 = vpack.c.bf16 %v1025_v4, %v1747_v31  ;;  %v1057_v33 = vsel %vm1053_vm13, %v1581_v19, %v1541_v2  ;;  %v1055_v25 = vsel %vm1053_vm13, %v1542_v3, %v1582_v32 }
 0x18a   : > { %v1577_v26 = vunpack.i.h.bf16 %v1575_v20  ;;  %v1576_v27 = vunpack.i.l.bf16 %v1575_v20  ;;  %v1024_v28 = vsel %vm1023_vm12, %v1572_v15, %v1022_v21  ;;  %v1072_v42 = vsel %vm1068_vm15, %v1566_v22, %v1567_v23 }
 0x18b   : > { %v1084_v5 = vpack.c.bf16 %v1024_v28, %v1782_v55  ;;  %1121 = vmatpush1.bf16.msra.mxu1 %v1081_v10  ;;  %v1089_v49 = vpack.c.bf16 %v1072_v42, %v1072_v42 }
 0x18c   : > { %v1042_v34 = vsel %vm1038_vm14, %v1576_v27, %v1536_v12  ;;  %1122 = vmatprep.subr.bf16.mxu1 %v1086_v29  ;;  %v1040_v35 = vsel %vm1038_vm14, %v1537_v43, %v1577_v26 }
 0x18d   : > { %v1085_v36 = vpack.c.bf16 %v1057_v33, %v1042_v34  ;;  %v1037_v37 = vpop.permute.xlu0 %1036  ;;  %v1052_v39 = vpop.permute.xlu1 %1051  ;;  %1161 = vmatprep.subr.bf16.mxu0 %v1084_v5  ;;  %v1087_v41 = vpack.c.bf16 %v1055_v25, %v1040_v35  ;;  %v1105_v58 = vsel %vm675_vm0, %v1089_v49, 0 }
 0x18e   : > { %v1039_v55 = vsel %vm1038_vm14, %v1577_v26, %v1037_v37  ;;  %v1054_v31 = vsel %vm1053_vm13, %v1582_v32, %v1052_v39  ;;  %1162 = vmatpush1.bf16.msra.mxu0 %v1083_v46 }
 0x18f   : > { %v1088_v40 = vpack.c.bf16 %v1054_v31, %v1039_v55  ;;  %1123 = vmatpush1.bf16.msra.mxu1 %v1085_v36 }
 0x191   : > { %v1585_v44 = vpop.permute.xlu1 %1584  ;;  %1163 = vmatprep.subr.bf16.mxu0 %v1088_v40  ;;  %v1067_v48 = vpop.permute.xlu0 %1066 }
 0x192   : > { %v1587_v45 = vunpack.i.h.bf16 %v1585_v44  ;;  %v1586_v47 = vunpack.i.l.bf16 %v1585_v44  ;;  %1164 = vmatpush1.bf16.msra.mxu0 %v1087_v41 }
 0x194   : > { %v1069_v50 = vsel %vm1068_vm15, %v1587_v45, %v1067_v48  ;;  %v1071_v52 = vsel %vm1068_vm15, %v1567_v23, %v1586_v47  ;;  %v1070_v53 = vsel %vm1068_vm15, %v1586_v47, %v1587_v45 }
 0x195   : > { %v1092_v54 = vpack.c.bf16 %v1069_v50, %v1069_v50  ;;  %v1090_v56 = vpack.c.bf16 %v1071_v52, %v1071_v52  ;;  %v1091_v57 = vpack.c.bf16 %v1070_v53, %v1070_v53 }
 0x197   : > { %1463 = vmatprep.subr.msk.bf16.mxu1 %vm675_vm0, %v1090_v56  ;;  %1465 = vmatprep.subr.msk.bf16.mxu0 %vm675_vm0, %v1092_v54  ;;  %v1111_v59 = vsel %vm675_vm0, %v1091_v57, 0 }
 0x198   : > { %1125 = vmatpush1.bf16.msra.mxu1 %v1105_v58  ;;  %1166 = vmatpush1.bf16.msra.mxu0 %v1111_v59 }
 0x19b   : > { %1464 = vmatmul.mubr.msk.bf16.vlgmr.msra.gmra.mrb[4].mxu1 %vm1100_vm1, %v1093_v60  ;;  %1466 = vmatmul.mubr.msk.bf16.vlgmr.msra.gmra.mrb[4].mxu0 %vm1100_vm1, %v1093_v60 }
 0x1a2   : > { %v1098_v8 = vpop.permute.xlu1 %1097 }
 0x26e   : > { %v1150_v61 = vpop.f32.mrb[4].mxu1  ;;  %v1191_v62 = vpop.f32.mrb[4].mxu0 }
 0x26f   : > { %v1151_v63 = vadd.f32 %v1150_v61, %v1098_v8  ;;  %v1192_v0 = vadd.f32 %v1191_v62, %v1098_v8  ;;  %v1152_v1 = vpop.f32.mrb[5].mxu1  ;;  %v1193_v3 = vpop.f32.mrb[5].mxu0 }
 0x270   : > { %v1153_v2 = vadd.f32 %v1152_v1, %v1098_v8  ;;  %v1194_v6 = vadd.f32 %v1193_v3, %v1098_v8  ;;  %v1154_v9 = vpop.f32.mrb[6].mxu1  ;;  %v1195_v11 = vpop.f32.mrb[6].mxu0 }
 0x271   : > { %vm1198_vm0 = vcmp.gt.f32.partialorder %v1151_v63, 0.0  ;;  %v1202_v43 = vmul.f32 0.01, %v1151_v63  ;;  %vm1200_vm2 = vcmp.gt.f32.partialorder %v1192_v0, 0.0  ;;  %v1204_v12 = vmul.f32 0.01, %v1192_v0 }
 0x272   : > { %vm1199_vm3 = vcmp.gt.f32.partialorder %v1153_v2, 0.0  ;;  %v1203_v13 = vmul.f32 0.01, %v1153_v2  ;;  %vm1201_vm4 = vcmp.gt.f32.partialorder %v1194_v6, 0.0  ;;  %v1205_v14 = vmul.f32 0.01, %v1194_v6 }
 0x273   : > { %v1206_v15 = vsel %vm1198_vm0, %v1151_v63, %v1202_v43  ;;  %v1208_v17 = vsel %vm1200_vm2, %v1192_v0, %v1204_v12  ;;  %v1155_v7 = vpop.f32.mrb[7].mxu1  ;;  %v1196_v18 = vpop.f32.mrb[7].mxu0 }
 0x274   : > { %v1210_v19 = vmul.f32 %v1206_v15, %v1753_v38  ;;  %v1207_v4 = vsel %vm1199_vm3, %v1153_v2, %v1203_v13  ;;  %v1209_v10 = vsel %vm1201_vm4, %v1194_v6, %v1205_v14  ;;  %v1212_v20 = vmul.f32 %v1208_v17, %v1734_v16 }
 0x275   : > { %v1211_v21 = vmul.f32 %v1207_v4, %v1745_v30  ;;  %v1213_v26 = vmul.f32 %v1209_v10, %v1775_v51 }
 0x276   : > { %1214 = vst [vmem:[%s621_s23] sm:$0xff] %v1210_v19  ;;  %v1225_v24 = vmul.f32 %v1210_v19, %v1210_v19  ;;  %1216 = vst [vmem:[%s621_s23 + $0x10] sm:$0xff] %v1212_v20  ;;  %v1227_v23 = vmul.f32 %v1212_v20, %v1212_v20 }
 0x277   : > { %1215 = vst [vmem:[%s621_s23 + $0x8] sm:$0xff] %v1211_v21  ;;  %v1218_v27 = vadd.f32 %v1211_v21, %v1210_v19  ;;  %v1226_v28 = vmul.f32 %v1211_v21, %v1211_v21  ;;  %1217 = vst [vmem:[%s621_s23 + $0x18] sm:$0xff] %v1213_v26  ;;  %v1228_v5 = vmul.f32 %v1213_v26, %v1213_v26 }
 0x279   : > { %v1219_v29 = vadd.f32 %v1218_v27, %v1212_v20  ;;  %v1229_v38 = vadd.f32 %v1226_v28, %v1225_v24 }
 0x27b   : > { %v1220_v32 = vadd.f32 %v1219_v29, %v1213_v26  ;;  %v1230_v22 = vadd.f32 %v1229_v38, %v1227_v23 }
 0x27d   : > { %1221 = vadd.xlane.f32.xlu0 %v1220_v32  ;;  %v1231_v16 = vadd.f32 %v1230_v22, %v1228_v5 }
 0x27f   : > { %1232 = vadd.xlane.f32.xlu1 %v1231_v16 }
 0x30a   : > { %v1222_v30 = vpop.xlane.xlu0 %1221 }
 0x30b   : > { %1224 = vst.msk [vmem:[%s626_s26] sm:$0xff] %vm1223_vm5, %v1222_v30 }
 0x30c   : > { %v1233_v51 = vpop.xlane.xlu1 %1232 }
 0x30d   : > { %1234 = vst.msk [vmem:[%s630_s13] sm:$0xff] %vm1223_vm5, %v1233_v51 }
 0x30e PF: > { %s23_s21 = sadd.s32 1, %s1597_s21  }
 0x30f   : > { %p20_p8 = scmp.ge.s32.totalorder %s23_s21, 4  }
 0x311   :  { %22 = sbr.rel (!%p20_p8) target bundleno = 1 (0x1), region = 129 }

</bundles_post_ra>
